<compile_context>
chip_gen: v7x
topology: tpu7x:2x2x1
jax: 0.10.0
libtpu: 0.0.40
codegen_flags: <defaults>
</compile_context>

<pallas_src>
import functools

import jax
import jax.numpy as jnp
from jax.experimental import pallas as pl
from jax.experimental.pallas import tpu as pltpu


def _round_up(x: int, m: int) -> int:
    return ((x + m - 1) // m) * m


def _cdiv(a: int, b: int) -> int:
    return (a + b - 1) // b


def _default_num_splits() -> int:
    # v7x has 2 TensorCores per chip: a leading "parallel" grid axis lets both
    # cores stream disjoint node ranges.  v5e / v6e have 1 TC -> keep 1.
    try:
        kind = jax.devices()[0].device_kind.lower()
    except Exception:
        return 1
    return 2 if "v7" in kind else 1


def _gated_regression_kernel(x_ref, gid_ref,
                             wg1_ref, bg1_ref,
                             w2_ref, b2_ref, cnt_ref,
                             out_ref,
                             *, n_nodes: int, tile_n: int, tiles_per_split: int):
    s = pl.program_id(0)          # node-range split ("parallel"; megacore on v7x)
    i = pl.program_id(1)          # node tile within the split ("arbitrary")

    @pl.when(i == 0)
    def _():
        out_ref[...] = jnp.zeros_like(out_ref)

    cdtype = wg1_ref.dtype                               # f32 or bf16
    x = x_ref[...]                                       # [TILE_N, D], compute dtype

    # Fused gate + hidden matmul: one pass of x through the MXU.
    # column 0 of z = gate logit, columns 1..H = hidden pre-activation.
    z = jnp.dot(x, wg1_ref[...],
                preferred_element_type=jnp.float32) + bg1_ref[...]   # [TILE_N, C_pad]
    gate = jax.nn.sigmoid(z[:, 0:1])                     # [TILE_N, 1] f32 (EUP)

    # Second MLP matmul: W2 rows for the gate / padding columns are zero, so
    # the padded z feeds straight in; lane `output_dim` of y is exactly 0.
    y = jnp.dot(z.astype(cdtype), w2_ref[...],
                preferred_element_type=jnp.float32) + b2_ref[...]    # [TILE_N, O_LANE]

    # gate * mlp plus the constant count row (lane `output_dim` -> 1.0 / node).
    values = gate * y + cnt_ref[...]

    # Mask ragged-tail / over-split rows.  OOB tile reads contain garbage
    # (possibly NaN) and 0 * NaN = NaN inside the pooling matmul, so the
    # values themselves must be zeroed here, not just the one-hot.
    row_ids = ((s * tiles_per_split + i) * tile_n
               + jax.lax.broadcasted_iota(jnp.int32, (tile_n, 1), 0))
    values = jnp.where(row_ids < n_nodes, values, 0.0)

    # Segment sums + counts on the MXU.  One-hot is [G_pad(8-aligned), TILE_N]
    # (graph axis on sublanes), so no transpose and no 128-padding of G.
    # TODO(synk): for num_graphs in the hundreds+, switch to scalar-prefetched
    # per-graph offset segments instead of the dense one-hot matmul.
    g_pad = out_ref.shape[0]
    graph_iota = jax.lax.broadcasted_iota(jnp.int32, (g_pad, tile_n), 0)
    onehot = (gid_ref[...] == graph_iota)                # [G_pad, TILE_N]
    out_ref[...] += jnp.dot(onehot.astype(cdtype), values.astype(cdtype),
                            preferred_element_type=jnp.float32)      # [G_pad, O_LANE]


def _pack_params(params, input_dim, hidden_dim, output_dim, compute_dtype):
    """Fuse Wg into W1 and zero-pad everything to lane-dense shapes."""
    c_pad = _round_up(1 + hidden_dim, 128)               # 128 for small hidden_dim
    o_lane = _round_up(output_dim + 1, 128)              # +1 for the count column

    wg1 = jnp.zeros((input_dim, c_pad), jnp.float32)
    wg1 = wg1.at[:, 0:1].set(params["wg"])
    wg1 = wg1.at[:, 1:1 + hidden_dim].set(params["w1"])

    bg1 = jnp.zeros((1, c_pad), jnp.float32)
    bg1 = bg1.at[:, 0:1].set(params["bg"])
    bg1 = bg1.at[:, 1:1 + hidden_dim].set(params["b1"])

    # INVARIANT: row 0 (gate), rows 1+hidden.. and columns output_dim.. of
    # w2p / b2p MUST stay zero — the count column and the padded lanes of the
    # accumulator rely on it.
    w2p = jnp.zeros((c_pad, o_lane), jnp.float32)
    w2p = w2p.at[1:1 + hidden_dim, :output_dim].set(params["w2"])

    b2p = jnp.zeros((1, o_lane), jnp.float32)
    b2p = b2p.at[:, :output_dim].set(params["b2"])

    # Constant resident "count row": lane `output_dim` carries 1.0 so per-graph
    # node counts fall out of the pooling matmul (no per-tile iota/compare).
    cnt = jnp.zeros((1, o_lane), jnp.float32).at[0, output_dim].set(1.0)

    return (wg1.astype(compute_dtype), bg1,
            w2p.astype(compute_dtype), b2p, cnt, c_pad, o_lane)


def gated_regression_forward(x, graph_id, params, num_graphs,
                             *, tile_n=None, num_splits=None,
                             compute_dtype=jnp.float32):
    """x: [num_nodes, input_dim]; graph_id: [num_nodes] int. Returns [num_graphs, output_dim]."""
    n_nodes, input_dim = x.shape
    hidden_dim = params["w1"].shape[1]
    output_dim = params["w2"].shape[1]

    wg1, bg1, w2p, b2p, cnt, c_pad, o_lane = _pack_params(
        params, input_dim, hidden_dim, output_dim, compute_dtype)

    g_pad = _round_up(num_graphs, 8)                     # sublane-aligned only
    x_bpe = jnp.dtype(compute_dtype).itemsize

    # Byte-based node tile: ~1 MiB of x per tile, rounded to a multiple of 128
    # (required by the [1, TILE_N] graph_id row), never larger than the
    # (128-rounded) node count, capped at 4096 rows.
    if tile_n is None:
        tile_n = (1 << 20) // max(1, input_dim * x_bpe)
    tile_n = int(max(128, min(_round_up(int(tile_n), 128),
                              max(128, _round_up(n_nodes, 128)),
                              4096)))

    def vmem_est(tn):
        weights = ((input_dim * c_pad + c_pad * o_lane) * x_bpe
                   + (c_pad + 2 * o_lane) * 4)                       # W + biases + count row
        stream = 2 * tn * (input_dim * x_bpe + 4)                     # x + gid (double-buffered)
        temps = tn * (c_pad + 2 * o_lane) * 4 + g_pad * tn * 4        # z, y/values, one-hot
        outs = 2 * g_pad * o_lane * 4
        return weights + stream + temps + outs

    # Keep the working set well inside scoped VMEM on every generation
    # (v5e/v6e: 128 MiB physical; v7x: 64 MiB physical -> cap the limit at 48 MiB).
    while tile_n > 128 and 2 * vmem_est(tile_n) > (40 << 20):
        tile_n = max(128, _round_up(tile_n // 2, 128))
    vmem_limit = int(min(48 << 20, max(16 << 20, 2 * vmem_est(tile_n))))

    n_tiles = _cdiv(n_nodes, tile_n)
    if num_splits is None:
        num_splits = _default_num_splits()
    num_splits = int(max(1, min(int(num_splits), n_tiles)))
    tiles_per_split = _cdiv(n_tiles, num_splits)

    # Stream x in the compute dtype (bf16 halves the dominant HBM traffic);
    # no device-side padded copy — ragged tiles are masked inside the kernel.
    x_in = x if x.dtype == compute_dtype else x.astype(compute_dtype)
    gid_row = graph_id.astype(jnp.int32).reshape(1, n_nodes)

    def node_tile(s, i):
        # Clamp so over-split tile indices never point past the array; those
        # tiles are fully masked in-kernel via the row-index mask.
        return jnp.minimum(s * tiles_per_split + i, n_tiles - 1)

    kernel = functools.partial(_gated_regression_kernel, n_nodes=n_nodes,
                               tile_n=tile_n, tiles_per_split=tiles_per_split)

    out_slabs = pl.pallas_call(
        kernel,
        out_shape=jax.ShapeDtypeStruct((num_splits, g_pad, o_lane), jnp.float32),
        grid_spec=pltpu.PrefetchScalarGridSpec(
            num_scalar_prefetch=0,
            grid=(num_splits, tiles_per_split),
            in_specs=[
                pl.BlockSpec((tile_n, input_dim), lambda s, i: (node_tile(s, i), 0)),  # x tile
                pl.BlockSpec((1, tile_n), lambda s, i: (0, node_tile(s, i))),          # gid row
                pl.BlockSpec((input_dim, c_pad), lambda s, i: (0, 0)),                 # fused Wg|W1
                pl.BlockSpec((1, c_pad), lambda s, i: (0, 0)),                         # fused bg|b1
                pl.BlockSpec((c_pad, o_lane), lambda s, i: (0, 0)),                    # padded W2
                pl.BlockSpec((1, o_lane), lambda s, i: (0, 0)),                        # padded b2
                pl.BlockSpec((1, o_lane), lambda s, i: (0, 0)),                        # count row
            ],
            out_specs=pl.BlockSpec((None, g_pad, o_lane), lambda s, i: (s, 0, 0)),
        ),
        compiler_params=pltpu.CompilerParams(
            dimension_semantics=("parallel", "arbitrary"),   # split axis || ; node axis = reduction
            vmem_limit_bytes=vmem_limit,
        ),
    )(x_in, gid_row, wg1, bg1, w2p, b2p, cnt)

    # Tiny epilogue: combine per-split slabs, divide by counts (mean pool).
    sums = out_slabs.sum(axis=0)                                      # [G_pad, O_LANE]
    counts = jnp.maximum(sums[:, output_dim:output_dim + 1], 1.0)     # zero-node graphs -> 0
    return (sums[:, :output_dim] / counts)[:num_graphs]


def _xavier_uniform(key, fan_in, fan_out):
    # matches torch.nn.init.xavier_uniform_ (gain=1) for a Linear weight,
    # stored as [fan_in, fan_out] (i.e. W.T relative to torch's [out, in]).
    limit = jnp.sqrt(6.0 / (fan_in + fan_out))
    return jax.random.uniform(key, (fan_in, fan_out), jnp.float32, -limit, limit)


def init_params(key, input_dim, hidden_dim, output_dim):
    k1, k2, k3, k4, k5, k6 = jax.random.split(key, 6)
    return {
        # gate: Linear(input_dim -> 1)
        "wg": _xavier_uniform(k1, input_dim, 1),
        "bg": jax.random.normal(k2, (1, 1), jnp.float32) * 1e-5,
        # mlp: Linear(input_dim -> hidden_dim) -> Linear(hidden_dim -> output_dim)
        "w1": _xavier_uniform(k3, input_dim, hidden_dim),
        "b1": jax.random.normal(k4, (1, hidden_dim), jnp.float32) * 1e-5,
        "w2": _xavier_uniform(k5, hidden_dim, output_dim),
        "b2": jax.random.normal(k6, (1, output_dim), jnp.float32) * 1e-5,
    }


def _reference(x, graph_id, params, num_graphs):
    gate = jax.nn.sigmoid(x @ params["wg"] + params["bg"])
    y = (x @ params["w1"] + params["b1"]) @ params["w2"] + params["b2"]
    values = gate * y
    onehot = jax.nn.one_hot(graph_id, num_graphs, dtype=jnp.float32)   # [N, G]
    sums = onehot.T @ values
    counts = jnp.maximum(onehot.sum(axis=0)[:, None], 1.0)
    return sums / counts


if __name__ == "__main__":
    # Small shapes consistent with the module's forward:
    #   x: [num_nodes=300, input_dim=32], graph_id: [300], hidden=32, output=8.
    # num_nodes=300 deliberately exercises multi-tile accumulation + ragged-tail
    # masking (tile_n is always a multiple of 128).
    num_nodes, input_dim, hidden_dim, output_dim, num_graphs = 300, 32, 32, 8, 5

    key = jax.random.PRNGKey(0)
    kx, kg, kp = jax.random.split(key, 3)

    x = jax.random.normal(kx, (num_nodes, input_dim), jnp.float32)
    graph_id = jnp.sort(jax.random.randint(kg, (num_nodes,), 0, num_graphs, jnp.int32))
    params = init_params(kp, input_dim, hidden_dim, output_dim)

    # NOTE: dropout (p>0) is a no-op in eval/inference mode, so it is omitted.
    ref = _reference(x, graph_id, params, num_graphs)

    # 1) Default config: auto (byte-based) tile, auto split count, f32 path.
    out = gated_regression_forward(x, graph_id, params, num_graphs)
    jax.block_until_ready(out)
    assert out.shape == (num_graphs, output_dim)
    assert jnp.allclose(out, ref, atol=1e-5, rtol=1e-5), "mismatch (default config)"

    # 2) Multi-tile + 2-way node split: exercises in-out accumulation, ragged
    #    masking, clamped over-split tiles and the per-split slab epilogue
    #    (runs sequentially on 1-TC chips, across both cores on v7x).
    out2 = gated_regression_forward(x, graph_id, params, num_graphs,
                                    tile_n=128, num_splits=2)
    jax.block_until_ready(out2)
    assert jnp.allclose(out2, ref, atol=1e-5, rtol=1e-5), "mismatch (split config)"

    # 3) bf16 streaming / bf16 MXU path (f32 accumulation, sigmoid in f32 so it
    #    is also v5e-safe); looser tolerance vs the f32 reference.
    out3 = gated_regression_forward(x, graph_id, params, num_graphs,
                                    compute_dtype=jnp.bfloat16)
    jax.block_until_ready(out3)
    assert jnp.allclose(out3, ref, atol=5e-2, rtol=5e-2), "mismatch (bf16 config)"

    print("KERNEL_OK")
</pallas_src>

<mosaic_0001>
module attributes {stable_mosaic.version = 11 : i64} {
  func.func @_gated_regression_kernel(%arg0: i32, %arg1: i32, %arg2: memref<384x32xf32, #tpu.memory_space<vmem>>, %arg3: memref<1x384xi32, #tpu.memory_space<vmem>>, %arg4: memref<32x128xf32, #tpu.memory_space<vmem>>, %arg5: memref<1x128xf32, #tpu.memory_space<vmem>>, %arg6: memref<128x128xf32, #tpu.memory_space<vmem>>, %arg7: memref<1x128xf32, #tpu.memory_space<vmem>>, %arg8: memref<1x128xf32, #tpu.memory_space<vmem>>, %arg9: memref<1x8x128xf32, #tpu.memory_space<vmem>>) attributes {dimension_semantics = [#tpu.dimension_semantics<parallel>, #tpu.dimension_semantics<arbitrary>], iteration_bounds = array<i64: 1, 1>, scalar_prefetch = 0 : i64, scratch_operands = 0 : i64, tpu.core_type = #tpu.core_type<tc>, window_params = [{transform_indices = @transform_0, window_bounds = array<i64: 384, 32>}, {transform_indices = @transform_1, window_bounds = array<i64: 1, 384>}, {pipeline_mode = #tpu.pipeline_mode<synchronous>, transform_indices = @transform_2, window_bounds = array<i64: 32, 128>}, {pipeline_mode = #tpu.pipeline_mode<synchronous>, transform_indices = @transform_3, window_bounds = array<i64: 1, 128>}, {pipeline_mode = #tpu.pipeline_mode<synchronous>, transform_indices = @transform_4, window_bounds = array<i64: 128, 128>}, {pipeline_mode = #tpu.pipeline_mode<synchronous>, transform_indices = @transform_5, window_bounds = array<i64: 1, 128>}, {pipeline_mode = #tpu.pipeline_mode<synchronous>, transform_indices = @transform_6, window_bounds = array<i64: 1, 128>}, {transform_indices = @transform_7, window_bounds = array<i64: 1, 8, 128>}]} {
    %c0_i32 = arith.constant 0 : i32
    %0 = arith.cmpi eq, %arg1, %c0_i32 : i32
    %1 = arith.extui %0 : i1 to i32
    %c0_i32_0 = arith.constant 0 : i32
    %2 = arith.cmpi ne, %1, %c0_i32_0 : i32
    scf.if %2 {
      %cst_24 = arith.constant 0.000000e+00 : f32
      %50 = vector.broadcast %cst_24 : f32 to vector<8x128xf32>
      %c0_25 = arith.constant 0 : index
      %c0_26 = arith.constant 0 : index
      %c0_27 = arith.constant 0 : index
      %51 = vector.load %arg9[%c0_25, %c0_26, %c0_27] : memref<1x8x128xf32, #tpu.memory_space<vmem>>, vector<1x8x128xf32>
      %52 = vector.shape_cast %51 : vector<1x8x128xf32> to vector<8x128xf32>
      %53 = vector.shape_cast %50 : vector<8x128xf32> to vector<1x8x128xf32>
      tpu.vector_store %arg9[%c0_25, %c0_26, %c0_27], %53 {strides = array<i32>} : memref<1x8x128xf32, #tpu.memory_space<vmem>>, vector<1x8x128xf32>,
    } else {
    }
    %c0 = arith.constant 0 : index
    %c0_1 = arith.constant 0 : index
    %3 = vector.load %arg2[%c0, %c0_1] : memref<384x32xf32, #tpu.memory_space<vmem>>, vector<384x32xf32>
    %c0_2 = arith.constant 0 : index
    %c0_3 = arith.constant 0 : index
    %4 = vector.load %arg4[%c0_2, %c0_3] : memref<32x128xf32, #tpu.memory_space<vmem>>, vector<32x128xf32>
    %cst = arith.constant dense<0.000000e+00> : vector<384x128xf32>
    %5 = tpu.matmul %3, %4, %cst {dimension_numbers = #tpu.dot_dimension_numbers<[1], [0], [0], [1], [0, 0, 1, 1], [], []>} : vector<384x32xf32>, vector<32x128xf32>, vector<384x128xf32> -> vector<384x128xf32>
    %c0_4 = arith.constant 0 : index
    %c0_5 = arith.constant 0 : index
    %6 = vector.load %arg5[%c0_4, %c0_5] : memref<1x128xf32, #tpu.memory_space<vmem>>, vector<1x128xf32>
    %7 = vector.broadcast %6 : vector<1x128xf32> to vector<384x128xf32>
    %8 = arith.addf %5, %7 : vector<384x128xf32>
    %9 = vector.extract_strided_slice %8 {offsets = [0, 0], sizes = [384, 1], strides = [1, 1]} : vector<384x128xf32> to vector<384x1xf32>
    %10 = arith.negf %9 : vector<384x1xf32>
    %11 = math.exp %10 : vector<384x1xf32>
    %cst_6 = arith.constant 1.000000e+00 : f32
    %12 = vector.broadcast %cst_6 : f32 to vector<384x1xf32>
    %13 = arith.addf %12, %11 : vector<384x1xf32>
    %14 = arith.divf %12, %13 : vector<384x1xf32>
    %c0_7 = arith.constant 0 : index
    %c0_8 = arith.constant 0 : index
    %15 = vector.load %arg6[%c0_7, %c0_8] : memref<128x128xf32, #tpu.memory_space<vmem>>, vector<128x128xf32>
    %cst_9 = arith.constant dense<0.000000e+00> : vector<384x128xf32>
    %16 = tpu.matmul %8, %15, %cst_9 {dimension_numbers = #tpu.dot_dimension_numbers<[1], [0], [0], [1], [0, 0, 1, 1], [], []>} : vector<384x128xf32>, vector<128x128xf32>, vector<384x128xf32> -> vector<384x128xf32>
    %c0_10 = arith.constant 0 : index
    %c0_11 = arith.constant 0 : index
    %17 = vector.load %arg7[%c0_10, %c0_11] : memref<1x128xf32, #tpu.memory_space<vmem>>, vector<1x128xf32>
    %18 = vector.broadcast %17 : vector<1x128xf32> to vector<384x128xf32>
    %19 = arith.addf %16, %18 : vector<384x128xf32>
    %20 = vector.broadcast %14 : vector<384x1xf32> to vector<384x128xf32>
    %21 = arith.mulf %20, %19 : vector<384x128xf32>
    %c0_12 = arith.constant 0 : index
    %c0_13 = arith.constant 0 : index
    %22 = vector.load %arg8[%c0_12, %c0_13] : memref<1x128xf32, #tpu.memory_space<vmem>>, vector<1x128xf32>
    %23 = vector.broadcast %22 : vector<1x128xf32> to vector<384x128xf32>
    %24 = arith.addf %21, %23 : vector<384x128xf32>
    %c1_i32 = arith.constant 1 : i32
    %25 = arith.muli %arg0, %c1_i32 : i32
    %26 = arith.addi %25, %arg1 : i32
    %c384_i32 = arith.constant 384 : i32
    %27 = arith.muli %26, %c384_i32 : i32
    %28 = tpu.iota {dimensions = array<i32: 0>} : vector<384x1xi32>
    %29 = vector.broadcast %27 : i32 to vector<384x1xi32>
    %30 = arith.addi %29, %28 : vector<384x1xi32>
    %c300_i32 = arith.constant 300 : i32
    %31 = vector.broadcast %c300_i32 : i32 to vector<384x1xi32>
    %32 = arith.cmpi slt, %30, %31 : vector<384x1xi32>
    %cst_14 = arith.constant 0.000000e+00 : f32
    %33 = vector.shape_cast %32 : vector<384x1xi1> to vector<384x1xi1>
    %34 = vector.broadcast %33 : vector<384x1xi1> to vector<384x128xi1>
    %35 = vector.broadcast %cst_14 : f32 to vector<384x128xf32>
    %36 = arith.select %34, %24, %35 : vector<384x128xi1>, vector<384x128xf32>
    %37 = tpu.iota {dimensions = array<i32: 0>} : vector<8x384xi32>
    %c0_15 = arith.constant 0 : index
    %c0_16 = arith.constant 0 : index
    %38 = vector.load %arg3[%c0_15, %c0_16] : memref<1x384xi32, #tpu.memory_space<vmem>>, vector<1x384xi32>
    %39 = vector.broadcast %38 : vector<1x384xi32> to vector<8x384xi32>
    %40 = arith.cmpi eq, %39, %37 : vector<8x384xi32>
    %c0_17 = arith.constant 0 : index
    %c0_18 = arith.constant 0 : index
    %c0_19 = arith.constant 0 : index
    %41 = vector.load %arg9[%c0_17, %c0_18, %c0_19] : memref<1x8x128xf32, #tpu.memory_space<vmem>>, vector<1x8x128xf32>
    %42 = vector.shape_cast %41 : vector<1x8x128xf32> to vector<8x128xf32>
    %43 = arith.extui %40 : vector<8x384xi1> to vector<8x384xi32>
    %44 = arith.sitofp %43 : vector<8x384xi32> to vector<8x384xf32>
    %cst_20 = arith.constant dense<0.000000e+00> : vector<8x128xf32>
    %45 = tpu.matmul %44, %36, %cst_20 {dimension_numbers = #tpu.dot_dimension_numbers<[1], [0], [0], [1], [0, 0, 1, 1], [], []>} : vector<8x384xf32>, vector<384x128xf32>, vector<8x128xf32> -> vector<8x128xf32>
    %46 = arith.addf %42, %45 : vector<8x128xf32>
    %c0_21 = arith.constant 0 : index
    %c0_22 = arith.constant 0 : index
    %c0_23 = arith.constant 0 : index
    %47 = vector.load %arg9[%c0_21, %c0_22, %c0_23] : memref<1x8x128xf32, #tpu.memory_space<vmem>>, vector<1x8x128xf32>
    %48 = vector.shape_cast %47 : vector<1x8x128xf32> to vector<8x128xf32>
    %49 = vector.shape_cast %46 : vector<8x128xf32> to vector<1x8x128xf32>
    tpu.vector_store %arg9[%c0_21, %c0_22, %c0_23], %49 {strides = array<i32>} : memref<1x8x128xf32, #tpu.memory_space<vmem>>, vector<1x8x128xf32>,
    return
  }
  func.func @transform_0(%arg0: i32, %arg1: i32) -> (i32, i32) {
    %c1_i32 = arith.constant 1 : i32
    %0 = arith.muli %arg0, %c1_i32 : i32
    %1 = arith.addi %0, %arg1 : i32
    %c0_i32 = arith.constant 0 : i32
    %2 = arith.minsi %1, %c0_i32 : i32
    %c0_i32_0 = arith.constant 0 : i32
    %c0_i32_1 = arith.constant 0 : i32
    return %2, %c0_i32_0 : i32, i32
  }
  func.func @transform_1(%arg0: i32, %arg1: i32) -> (i32, i32) {
    %c1_i32 = arith.constant 1 : i32
    %0 = arith.muli %arg0, %c1_i32 : i32
    %1 = arith.addi %0, %arg1 : i32
    %c0_i32 = arith.constant 0 : i32
    %2 = arith.minsi %1, %c0_i32 : i32
    %c0_i32_0 = arith.constant 0 : i32
    %c0_i32_1 = arith.constant 0 : i32
    return %c0_i32_0, %2 : i32, i32
  }
  func.func @transform_2(%arg0: i32, %arg1: i32) -> (i32, i32) {
    %c0_i32 = arith.constant 0 : i32
    %c0_i32_0 = arith.constant 0 : i32
    %c0_i32_1 = arith.constant 0 : i32
    return %c0_i32, %c0_i32_0 : i32, i32
  }
  func.func @transform_3(%arg0: i32, %arg1: i32) -> (i32, i32) {
    %c0_i32 = arith.constant 0 : i32
    %c0_i32_0 = arith.constant 0 : i32
    %c0_i32_1 = arith.constant 0 : i32
    return %c0_i32, %c0_i32_0 : i32, i32
  }
  func.func @transform_4(%arg0: i32, %arg1: i32) -> (i32, i32) {
    %c0_i32 = arith.constant 0 : i32
    %c0_i32_0 = arith.constant 0 : i32
    %c0_i32_1 = arith.constant 0 : i32
    return %c0_i32, %c0_i32_0 : i32, i32
  }
  func.func @transform_5(%arg0: i32, %arg1: i32) -> (i32, i32) {
    %c0_i32 = arith.constant 0 : i32
    %c0_i32_0 = arith.constant 0 : i32
    %c0_i32_1 = arith.constant 0 : i32
    return %c0_i32, %c0_i32_0 : i32, i32
  }
  func.func @transform_6(%arg0: i32, %arg1: i32) -> (i32, i32) {
    %c0_i32 = arith.constant 0 : i32
    %c0_i32_0 = arith.constant 0 : i32
    %c0_i32_1 = arith.constant 0 : i32
    return %c0_i32, %c0_i32_0 : i32, i32
  }
  func.func @transform_7(%arg0: i32, %arg1: i32) -> (i32, i32, i32) {
    %c0_i32 = arith.constant 0 : i32
    %c0_i32_0 = arith.constant 0 : i32
    %c0_i32_1 = arith.constant 0 : i32
    return %arg0, %c0_i32, %c0_i32_0 : i32, i32, i32
  }
}

</mosaic_0001>

<bundles_post_ra>
// kernel: tpu_custom_call.1
= control target key start
LH: loop header
LB: loop body
LE: loop exit
PB: predicated region body
PF: predicated region fallthrough
CT: control target
= control target key end

     0   :  { %vm162_vm0 = vcmask 261120   ;;  %s3412_s0 = inlined_call_operand.vmem [shape: f32[300,32], index: 0, kind: input, shape index: {}]   ;;  %s3413_s1 = inlined_call_operand.vmem [shape: s32[1,300], index: 1, kind: input, shape index: {}]   ;;  %s3414_s2 = inlined_call_operand.vmem [shape: f32[32,128], index: 2, kind: input, shape index: {}]   ;;  %s3415_s3 = inlined_call_operand.vmem [shape: f32[1,128], index: 3, kind: input, shape index: {}]   ;;  %s3416_s4 = inlined_call_operand.vmem [shape: f32[128,128], index: 4, kind: input, shape index: {}]   ;;  %s3417_s5 = inlined_call_operand.vmem [shape: f32[1,128], index: 5, kind: input, shape index: {}]   ;;  %s3418_s6 = inlined_call_operand.vmem [shape: f32[1,128], index: 6, kind: input, shape index: {}]   ;;  %s3419_s7 = inlined_call_operand.hbm [shape: f32[1,8,128], index: 7, kind: output, shape index: {}]  }
   0x1   :  { %v151_v0 = vld [vmem:[%s3414_s2] sm:$0xff]  ;;  %v152_v1 = vld [vmem:[%s3414_s2 + $0x8] sm:$0xff]  ;;  %v153_v2 = vld [vmem:[%s3414_s2 + $0x10] sm:$0xff] }
   0x2   :  { %v2514_v3 = vpack.c.bf16 %v152_v1, %v151_v0  ;;  %v154_v4 = vld [vmem:[%s3414_s2 + $0x18] sm:$0xff]  ;;  %v103_v5 = vld [vmem:[%s3412_s0] sm:$0xff]  ;;  %v104_v7 = vld [vmem:[%s3412_s0 + $0x8] sm:$0xff] }
   0x3   :  { %v2518_v6 = vpack.c.bf16 %v154_v4, %v153_v2  ;;  %2323 = vmatprep.mubr.msk.f32.mxu0 %vm162_vm0, %v103_v5  ;;  %v105_v8 = vld [vmem:[%s3412_s0 + $0x10] sm:$0xff]  ;;  %v106_v9 = vld [vmem:[%s3412_s0 + $0x18] sm:$0xff]  ;;  %v107_v10 = vld [vmem:[%s3412_s0 + $0x20] sm:$0xff] }
   0x4   :  { %2515 = vmatprep.subr.bf16.mxu0 %v2514_v3  ;;  %v900_v11 = vld [vmem:[%s3416_s4] sm:$0xff]  ;;  %v901_v12 = vld [vmem:[%s3416_s4 + $0x8] sm:$0xff]  ;;  %v902_v13 = vld [vmem:[%s3416_s4 + $0x10] sm:$0xff] }
   0x5   :  { %2517 = vmatpush3.bf16.msra.mxu0 %v2514_v3  ;;  %v2522_v14 = vpack.c.bf16 %v901_v12, %v900_v11  ;;  %v903_v15 = vld [vmem:[%s3416_s4 + $0x18] sm:$0xff]  ;;  %v108_v16 = vld [vmem:[%s3412_s0 + $0x28] sm:$0xff]  ;;  %v904_v18 = vld [vmem:[%s3416_s4 + $0x20] sm:$0xff] }
   0x6   :  { %2519 = vmatprep.subr.bf16.mxu0 %v2518_v6  ;;  %v2526_v17 = vpack.c.bf16 %v903_v15, %v902_v13  ;;  %v905_v19 = vld [vmem:[%s3416_s4 + $0x28] sm:$0xff]  ;;  %v109_v20 = vld [vmem:[%s3412_s0 + $0x30] sm:$0xff] }
   0x7   :  { %2523 = vmatprep.subr.bf16.mxu1 %v2522_v14 }
   0x8   :  { %2525 = vmatpush3.bf16.msra.mxu1 %v2522_v14 }
   0x9   :  { %2521 = vmatpush3.bf16.msra.mxu0 %v2518_v6 }
   0xc   :  { %2324 = vmatmul.mubr.msk.f32.vlgmr.msra.gmra.mrb[0].mxu0 %vm162_vm0, %v104_v7 }
   0xd   :  { %2326 = vmatprep.mubr.msk.f32.mxu0 %vm162_vm0, %v105_v8 }
  0x10   :  { %2327 = vmatmul.mubr.msk.f32.gmra.mrb[2].mxu0 %vm162_vm0, %v106_v9 }
  0x11   :  { %2329 = vmatprep.mubr.msk.f32.mxu0 %vm162_vm0, %v107_v10 }
  0x12   :  { %12 = vsyncpa [#allocation3], 0  ;;  %2527 = vmatprep.subr.bf16.mxu1 %v2526_v17  ;;  %v2530_v21 = vpack.c.bf16 %v905_v19, %v904_v18  ;;  %v110_v22 = vld [vmem:[%s3412_s0 + $0x38] sm:$0xff]  ;;  %v906_v23 = vld [vmem:[%s3416_s4 + $0x30] sm:$0xff]  ;;  %v2781_v4 = vmov 0   ;;  %vm2784_vm4 = vmmov 0  }
  0x13   :  { %v907_v24 = vld [vmem:[%s3416_s4 + $0x38] sm:$0xff]  ;;  %v111_v25 = vld [vmem:[%s3412_s0 + $0x40] sm:$0xff]  ;;  %2529 = vmatpush3.bf16.msra.mxu1 %v2526_v17  ;;  %v112_v27 = vld [vmem:[%s3412_s0 + $0x48] sm:$0xff]  ;;  %2603 = vset.pattern.permute.xlu1 %v2781_v4  ;;  %vm2786_vm6 = vmmov 1  }
  0x14   :  { %2330 = vmatmul.mubr.msk.f32.gmra.mrb[4].mxu0 %vm162_vm0, %v108_v16  ;;  %2531 = vmatprep.subr.bf16.mxu1 %v2530_v21  ;;  %v2534_v26 = vpack.c.bf16 %v907_v24, %v906_v23  ;;  %v908_v28 = vld [vmem:[%s3416_s4 + $0x40] sm:$0xff]  ;;  %v909_v29 = vld [vmem:[%s3416_s4 + $0x48] sm:$0xff]  ;;  %v113_v30 = vld [vmem:[%s3412_s0 + $0x50] sm:$0xff] }
  0x15   :  { %2332 = vmatprep.mubr.msk.f32.mxu0 %vm162_vm0, %v109_v20  ;;  %v2538_v31 = vpack.c.bf16 %v909_v29, %v908_v28  ;;  %v114_v32 = vld [vmem:[%s3412_s0 + $0x58] sm:$0xff]  ;;  %v910_v33 = vld [vmem:[%s3416_s4 + $0x50] sm:$0xff]  ;;  %v115_v35 = vld [vmem:[%s3412_s0 + $0x60] sm:$0xff]  ;;  %2604 = vset.pattern.permute.xlu0 %v2781_v4 }
  0x16   :  { %v911_v34 = vld [vmem:[%s3416_s4 + $0x58] sm:$0xff]  ;;  %v116_v37 = vld [vmem:[%s3412_s0 + $0x68] sm:$0xff]  ;;  %v912_v38 = vld [vmem:[%s3416_s4 + $0x60] sm:$0xff] }
  0x17   :  { %2533 = vmatpush3.bf16.msra.mxu1 %v2530_v21  ;;  %v2542_v36 = vpack.c.bf16 %v911_v34, %v910_v33  ;;  %v913_v39 = vld [vmem:[%s3416_s4 + $0x68] sm:$0xff]  ;;  %v117_v40 = vld [vmem:[%s3412_s0 + $0x70] sm:$0xff]  ;;  %v118_v42 = vld [vmem:[%s3412_s0 + $0x78] sm:$0xff] }
  0x18   :  { %2333 = vmatmul.mubr.msk.f32.gmra.mrb[6].mxu0 %vm162_vm0, %v110_v22  ;;  %2535 = vmatprep.subr.bf16.mxu1 %v2534_v26  ;;  %v2546_v41 = vpack.c.bf16 %v913_v39, %v912_v38  ;;  %v119_v43 = vld [vmem:[%s3412_s0 + $0x80] sm:$0xff]  ;;  %v120_v44 = vld [vmem:[%s3412_s0 + $0x88] sm:$0xff]  ;;  %v121_v45 = vld [vmem:[%s3412_s0 + $0x90] sm:$0xff] }
  0x19   :  { %2335 = vmatprep.mubr.msk.f32.mxu0 %vm162_vm0, %v111_v25  ;;  %v122_v46 = vld [vmem:[%s3412_s0 + $0x98] sm:$0xff]  ;;  %v123_v47 = vld [vmem:[%s3412_s0 + $0xa0] sm:$0xff]  ;;  %v124_v48 = vld [vmem:[%s3412_s0 + $0xa8] sm:$0xff] }
  0x1a   :  { %v125_v49 = vld [vmem:[%s3412_s0 + $0xb0] sm:$0xff]  ;;  %v126_v50 = vld [vmem:[%s3412_s0 + $0xb8] sm:$0xff]  ;;  %v127_v51 = vld [vmem:[%s3412_s0 + $0xc0] sm:$0xff] }
  0x1b   :  { %2537 = vmatpush3.bf16.msra.mxu1 %v2534_v26  ;;  %v128_v52 = vld [vmem:[%s3412_s0 + $0xc8] sm:$0xff]  ;;  %v129_v53 = vld [vmem:[%s3412_s0 + $0xd0] sm:$0xff]  ;;  %v130_v54 = vld [vmem:[%s3412_s0 + $0xd8] sm:$0xff] }
  0x1c   :  { %2336 = vmatmul.mubr.msk.f32.gmra.mrb[8].mxu0 %vm162_vm0, %v112_v27  ;;  %2539 = vmatprep.subr.bf16.mxu1 %v2538_v31  ;;  %v131_v55 = vld [vmem:[%s3412_s0 + $0xe0] sm:$0xff]  ;;  %v132_v56 = vld [vmem:[%s3412_s0 + $0xe8] sm:$0xff]  ;;  %v133_v57 = vld [vmem:[%s3412_s0 + $0xf0] sm:$0xff] }
  0x1d   :  { %2338 = vmatprep.mubr.msk.f32.mxu0 %vm162_vm0, %v113_v30  ;;  %v134_v58 = vld [vmem:[%s3412_s0 + $0xf8] sm:$0xff]  ;;  %v135_v59 = vld [vmem:[%s3412_s0 + $0x100] sm:$0xff]  ;;  %v136_v60 = vld [vmem:[%s3412_s0 + $0x108] sm:$0xff] }
  0x1e   :  { %v137_v61 = vld [vmem:[%s3412_s0 + $0x110] sm:$0xff]  ;;  %v138_v62 = vld [vmem:[%s3412_s0 + $0x118] sm:$0xff]  ;;  %v139_v63 = vld [vmem:[%s3412_s0 + $0x120] sm:$0xff] }
  0x1f   :  { %2541 = vmatpush3.bf16.msra.mxu1 %v2538_v31  ;;  %v140_v0 = vld [vmem:[%s3412_s0 + $0x128] sm:$0xff]  ;;  %v914_v1 = vld [vmem:[%s3416_s4 + $0x70] sm:$0xff]  ;;  %v915_v2 = vld [vmem:[%s3416_s4 + $0x78] sm:$0xff] }
  0x20   :  { %2339 = vmatmul.mubr.msk.f32.gmra.mrb[10].mxu0 %vm162_vm0, %v114_v32  ;;  %2543 = vmatprep.subr.bf16.mxu1 %v2542_v36  ;;  %v2550_v3 = vpack.c.bf16 %v915_v2, %v914_v1  ;;  %v141_v5 = vld [vmem:[%s3412_s0 + $0x130] sm:$0xff]  ;;  %v142_v6 = vld [vmem:[%s3412_s0 + $0x138] sm:$0xff]  ;;  %v143_v7 = vld [vmem:[%s3412_s0 + $0x140] sm:$0xff] }
  0x21   :  { %2341 = vmatprep.mubr.msk.f32.mxu0 %vm162_vm0, %v115_v35  ;;  %v144_v8 = vld [vmem:[%s3412_s0 + $0x148] sm:$0xff]  ;;  %v145_v9 = vld [vmem:[%s3412_s0 + $0x150] sm:$0xff]  ;;  %v146_v10 = vld [vmem:[%s3412_s0 + $0x158] sm:$0xff] }
  0x22   :  { %v147_v11 = vld [vmem:[%s3412_s0 + $0x160] sm:$0xff]  ;;  %v148_v12 = vld [vmem:[%s3412_s0 + $0x168] sm:$0xff]  ;;  %v149_v13 = vld [vmem:[%s3412_s0 + $0x170] sm:$0xff] }
  0x23   :  { %2545 = vmatpush3.bf16.msra.mxu1 %v2542_v36  ;;  %v150_v14 = vld [vmem:[%s3412_s0 + $0x178] sm:$0xff]  ;;  %v3083_v15 = vld [vmem:[%s3415_s3] ss:$0 sm:$0xff] }
  0x24   :  { %2342 = vmatmul.mubr.msk.f32.gmra.mrb[12].mxu0 %vm162_vm0, %v116_v37  ;;  %2547 = vmatprep.subr.bf16.mxu1 %v2546_v41 }
  0x25   :  { %2344 = vmatprep.mubr.msk.f32.mxu0 %vm162_vm0, %v117_v40 }
  0x27   :  { %2549 = vmatpush3.bf16.msra.mxu1 %v2546_v41 }
  0x28   :  { %2345 = vmatmul.mubr.msk.f32.gmra.mrb[14].mxu0 %vm162_vm0, %v118_v42  ;;  %2551 = vmatprep.subr.bf16.mxu1 %v2550_v3 }
  0x29   :  { %2347 = vmatprep.mubr.msk.f32.mxu0 %vm162_vm0, %v119_v43 }
  0x2b   :  { %2553 = vmatpush3.bf16.msra.mxu1 %v2550_v3 }
  0x2c   :  { %2348 = vmatmul.mubr.msk.f32.gmra.mrb[16].mxu0 %vm162_vm0, %v120_v44 }
  0x2d   :  { %2350 = vmatprep.mubr.msk.f32.mxu0 %vm162_vm0, %v121_v45 }
  0x30   :  { %2351 = vmatmul.mubr.msk.f32.gmra.mrb[18].mxu0 %vm162_vm0, %v122_v46 }
  0x31   :  { %2353 = vmatprep.mubr.msk.f32.mxu0 %vm162_vm0, %v123_v47 }
  0x34   :  { %2354 = vmatmul.mubr.msk.f32.gmra.mrb[20].mxu0 %vm162_vm0, %v124_v48 }
  0x35   :  { %2356 = vmatprep.mubr.msk.f32.mxu0 %vm162_vm0, %v125_v49 }
  0x38   :  { %2357 = vmatmul.mubr.msk.f32.gmra.mrb[22].mxu0 %vm162_vm0, %v126_v50 }
  0x39   :  { %2359 = vmatprep.mubr.msk.f32.mxu0 %vm162_vm0, %v127_v51 }
  0x3c   :  { %2360 = vmatmul.mubr.msk.f32.gmra.mrb[24].mxu0 %vm162_vm0, %v128_v52 }
  0x3d   :  { %2362 = vmatprep.mubr.msk.f32.mxu0 %vm162_vm0, %v129_v53 }
  0x40   :  { %2363 = vmatmul.mubr.msk.f32.gmra.mrb[26].mxu0 %vm162_vm0, %v130_v54 }
  0x41   :  { %2365 = vmatprep.mubr.msk.f32.mxu0 %vm162_vm0, %v131_v55 }
  0x44   :  { %2366 = vmatmul.mubr.msk.f32.gmra.mrb[28].mxu0 %vm162_vm0, %v132_v56 }
  0x45   :  { %2368 = vmatprep.mubr.msk.f32.mxu0 %vm162_vm0, %v133_v57 }
  0x48   :  { %2369 = vmatmul.mubr.msk.f32.gmra.mrb[30].mxu0 %vm162_vm0, %v134_v58 }
  0x49   :  { %2371 = vmatprep.mubr.msk.f32.mxu0 %vm162_vm0, %v135_v59 }
  0x4c   :  { %2372 = vmatmul.mubr.msk.f32.gmra.mrb[32].mxu0 %vm162_vm0, %v136_v60 }
  0x4d   :  { %2374 = vmatprep.mubr.msk.f32.mxu0 %vm162_vm0, %v137_v61 }
  0x50   :  { %2375 = vmatmul.mubr.msk.f32.gmra.mrb[34].mxu0 %vm162_vm0, %v138_v62 }
  0x51   :  { %2377 = vmatprep.mubr.msk.f32.mxu0 %vm162_vm0, %v139_v63 }
  0x54   :  { %2378 = vmatmul.mubr.msk.f32.gmra.mrb[36].mxu0 %vm162_vm0, %v140_v0 }
  0x55   :  { %2380 = vmatprep.mubr.msk.f32.mxu0 %vm162_vm0, %v141_v5 }
  0x58   :  { %2381 = vmatmul.mubr.msk.f32.gmra.mrb[38].mxu0 %vm162_vm0, %v142_v6 }
  0x59   :  { %2383 = vmatprep.mubr.msk.f32.mxu0 %vm162_vm0, %v143_v7 }
  0x5c   :  { %2384 = vmatmul.mubr.msk.f32.gmra.mrb[40].mxu0 %vm162_vm0, %v144_v8 }
  0x5d   :  { %2386 = vmatprep.mubr.msk.f32.mxu0 %vm162_vm0, %v145_v9 }
  0x60   :  { %2387 = vmatmul.mubr.msk.f32.gmra.mrb[42].mxu0 %vm162_vm0, %v146_v10 }
  0x61   :  { %2389 = vmatprep.mubr.msk.f32.mxu0 %vm162_vm0, %v147_v11 }
  0x64   :  { %2390 = vmatmul.mubr.msk.f32.gmra.mrb[44].mxu0 %vm162_vm0, %v148_v12 }
  0x65   :  { %2392 = vmatprep.mubr.msk.f32.mxu0 %vm162_vm0, %v149_v13 }
  0x68   :  { %2393 = vmatmul.mubr.msk.f32.gmra.mrb[46].mxu0 %vm162_vm0, %v150_v14 }
  0xdf   :  { %v2325_v16 = vpop.f32.mrb[0].mxu0 }
  0xe0   :  { %v379_v17 = vadd.f32 %v2325_v16, %v3083_v15  ;;  %v373_v18 = vpop.f32.mrb[1].mxu0 }
  0xe1   :  { %v374_v19 = vadd.f32 %v3083_v15, %v373_v18 }
  0xe2   :  { %v2101_v20 = vmul.f32 -1.442695, %v379_v17 }
  0xe3   :  { %v2100_v21 = vmul.f32 -1.442695, %v374_v19  ;;  %v2328_v22 = vpop.f32.mrb[2].mxu0  ;;  %2427 = vmatprep.mubr.f32.mxu1 %v374_v19 }
  0xe4   :  { %2605 = vpow2.f32 %v2101_v20  ;;  %v389_v23 = vadd.f32 %v2328_v22, %v3083_v15  ;;  %v383_v24 = vpop.f32.mrb[3].mxu0  ;;  %2428 = vmatmul.mubr.f32.vlgmr.msra.gmra.mrb[0].mxu1 %v379_v17 }
  0xe5   :  { %2607 = vpow2.f32 %v2100_v21  ;;  %v384_v25 = vadd.f32 %v3083_v15, %v383_v24 }
  0xe6   :  { %v2103_v26 = vmul.f32 -1.442695, %v389_v23 }
  0xe7   :  { %v2102_v27 = vmul.f32 -1.442695, %v384_v25  ;;  %v2331_v28 = vpop.f32.mrb[4].mxu0  ;;  %2430 = vmatprep.mubr.f32.mxu1 %v384_v25 }
  0xe8   :  { %2609 = vpow2.f32 %v2103_v26  ;;  %v399_v29 = vadd.f32 %v2331_v28, %v3083_v15  ;;  %v393_v30 = vpop.f32.mrb[5].mxu0  ;;  %2431 = vmatmul.mubr.f32.gmra.mrb[2].mxu1 %v389_v23 }
  0xe9   :  { %2611 = vpow2.f32 %v2102_v27  ;;  %v394_v31 = vadd.f32 %v3083_v15, %v393_v30 }
  0xea   :  { %v2105_v32 = vmul.f32 -1.442695, %v399_v29 }
  0xeb   :  { %v2104_v33 = vmul.f32 -1.442695, %v394_v31  ;;  %v2334_v34 = vpop.f32.mrb[6].mxu0  ;;  %2433 = vmatprep.mubr.f32.mxu1 %v394_v31 }
  0xec   :  { %2613 = vpow2.f32 %v2105_v32  ;;  %v409_v35 = vadd.f32 %v2334_v34, %v3083_v15  ;;  %v403_v36 = vpop.f32.mrb[7].mxu0  ;;  %2434 = vmatmul.mubr.f32.gmra.mrb[4].mxu1 %v399_v29 }
  0xed   :  { %2615 = vpow2.f32 %v2104_v33  ;;  %v404_v37 = vadd.f32 %v3083_v15, %v403_v36 }
  0xee   :  { %v2606_v38 = vpop.eup %2605  ;;  %v2107_v39 = vmul.f32 -1.442695, %v409_v35 }
  0xef   :  { %v2608_v40 = vpop.eup %2607  ;;  %v757_v41 = vadd.f32 1.0, %v2606_v38  ;;  %v2106_v42 = vmul.f32 -1.442695, %v404_v37  ;;  %v2337_v43 = vpop.f32.mrb[8].mxu0  ;;  %2436 = vmatprep.mubr.f32.mxu1 %v404_v37 }
  0xf0   :  { %2617 = vpow2.f32 %v2107_v39  ;;  %v419_v44 = vadd.f32 %v2337_v43, %v3083_v15  ;;  %v413_v45 = vpop.f32.mrb[9].mxu0  ;;  %2437 = vmatmul.mubr.f32.gmra.mrb[6].mxu1 %v409_v35  ;;  %v756_v46 = vadd.f32 1.0, %v2608_v40 }
  0xf1   :  { %2619 = vrcp.f32 %v757_v41  ;;  %v414_v47 = vadd.f32 %v3083_v15, %v413_v45 }
  0xf2   :  { %v2610_v48 = vpop.eup %2609  ;;  %v2109_v49 = vmul.f32 -1.442695, %v419_v44  ;;  %2621 = vpow2.f32 %v2106_v42 }
  0xf3   :  { %v2612_v50 = vpop.eup %2611  ;;  %v2108_v51 = vmul.f32 -1.442695, %v414_v47  ;;  %v2340_v52 = vpop.f32.mrb[10].mxu0  ;;  %2439 = vmatprep.mubr.f32.mxu1 %v414_v47  ;;  %v759_v56 = vadd.f32 1.0, %v2610_v48 }
  0xf4   :  { %v758_v53 = vadd.f32 1.0, %v2612_v50  ;;  %2623 = vpow2.f32 %v2109_v49  ;;  %v429_v54 = vadd.f32 %v2340_v52, %v3083_v15  ;;  %v423_v55 = vpop.f32.mrb[11].mxu0  ;;  %2440 = vmatmul.mubr.f32.gmra.mrb[8].mxu1 %v419_v44 }
  0xf5   :  { %2625 = vrcp.f32 %v756_v46  ;;  %v424_v57 = vadd.f32 %v3083_v15, %v423_v55 }
  0xf6   :  { %v2614_v58 = vpop.eup %2613  ;;  %2627 = vrcp.f32 %v758_v53  ;;  %v2111_v59 = vmul.f32 -1.442695, %v429_v54 }
  0xf7   :  { %v2616_v60 = vpop.eup %2615  ;;  %2629 = vpow2.f32 %v2108_v51  ;;  %v2110_v61 = vmul.f32 -1.442695, %v424_v57  ;;  %v2343_v62 = vpop.f32.mrb[12].mxu0  ;;  %2442 = vmatprep.mubr.f32.mxu1 %v424_v57  ;;  %v761_v2 = vadd.f32 1.0, %v2614_v58 }
  0xf8   :  { %v760_v63 = vadd.f32 1.0, %v2616_v60  ;;  %2631 = vpow2.f32 %v2111_v59  ;;  %v439_v0 = vadd.f32 %v2343_v62, %v3083_v15  ;;  %v433_v1 = vpop.f32.mrb[13].mxu0  ;;  %2443 = vmatmul.mubr.f32.gmra.mrb[10].mxu1 %v429_v54 }
  0xf9   :  { %2633 = vrcp.f32 %v759_v56  ;;  %v434_v3 = vadd.f32 %v3083_v15, %v433_v1 }
  0xfa   :  { %v2618_v4 = vpop.eup %2617  ;;  %2635 = vrcp.f32 %v760_v63  ;;  %v2113_v5 = vmul.f32 -1.442695, %v439_v0 }
  0xfb   :  { %v2620_v6 = vpop.eup %2619  ;;  %2637 = vpow2.f32 %v2110_v61  ;;  %v2112_v7 = vmul.f32 -1.442695, %v434_v3  ;;  %v2346_v8 = vpop.f32.mrb[14].mxu0  ;;  %2445 = vmatprep.mubr.f32.mxu1 %v434_v3  ;;  %v763_v11 = vadd.f32 1.0, %v2618_v4 }
  0xfc   :  { %2639 = vpow2.f32 %v2113_v5  ;;  %1235 = vperm.xlu1 %2603, %v2620_v6   ;;  %v443_v9 = vpop.f32.mrb[15].mxu0  ;;  %2446 = vmatmul.mubr.f32.gmra.mrb[12].mxu1 %v439_v0  ;;  %v2622_v10 = vpop.eup %2621  ;;  %v449_v16 = vadd.f32 %v2346_v8, %v3083_v15 }
  0xfd   :  { %2641 = vrcp.f32 %v761_v2  ;;  %v3100_v12 = vadd.f32 %v3083_v15, %v443_v9  ;;  %v762_v14 = vadd.f32 1.0, %v2622_v10 }
  0xfe   :  { %v2624_v13 = vpop.eup %2623  ;;  %2643 = vpow2.f32 %v2112_v7  ;;  %v2115_v54 = vmul.f32 -1.442695, %v449_v16 }
  0xff   :  { %v2626_v17 = vpop.eup %2625  ;;  %v765_v18 = vadd.f32 1.0, %v2624_v13  ;;  %v2349_v19 = vpop.f32.mrb[16].mxu0  ;;  %2448 = vmatprep.mubr.f32.mxu1 %v3100_v12  ;;  %2645 = vrcp.f32 %v762_v14 }
 0x100   :  { %v2628_v20 = vpop.eup %2627  ;;  %v459_v21 = vadd.f32 %v2349_v19, %v3083_v15  ;;  %v453_v22 = vpop.f32.mrb[17].mxu0  ;;  %2449 = vmatmul.mubr.f32.gmra.mrb[14].mxu1 %v449_v16  ;;  %1230 = vperm.xlu1 %2603, %v2626_v17   ;;  %2647 = vrcp.f32 %v763_v11 }
 0x101   :  { %v2630_v23 = vpop.eup %2629  ;;  %v454_v24 = vadd.f32 %v3083_v15, %v453_v22  ;;  %1240 = vperm.xlu0 %2604, %v2628_v20   ;;  %2649 = vrcp.f32 %v765_v18  ;;  %v2114_v18 = vmul.f32 -1.442695, %v3100_v12 }
 0x102   :  { %v2632_v25 = vpop.eup %2631  ;;  %v764_v26 = vadd.f32 1.0, %v2630_v23  ;;  %v2117_v27 = vmul.f32 -1.442695, %v459_v21 }
 0x103   :  { %v2634_v28 = vpop.eup %2633  ;;  %v767_v29 = vadd.f32 1.0, %v2632_v25  ;;  %v2116_v30 = vmul.f32 -1.442695, %v454_v24  ;;  %v2352_v31 = vpop.f32.mrb[18].mxu0  ;;  %2451 = vmatprep.mubr.f32.mxu1 %v454_v24 }
 0x104   :  { %v2636_v32 = vpop.eup %2635  ;;  %2651 = vrcp.f32 %v764_v26  ;;  %v469_v33 = vadd.f32 %v2352_v31, %v3083_v15  ;;  %v463_v34 = vpop.f32.mrb[19].mxu0  ;;  %2452 = vmatmul.mubr.f32.gmra.mrb[16].mxu1 %v459_v21  ;;  %1245 = vperm.xlu1 %2603, %v2634_v28  }
 0x105   :  { %v2638_v35 = vpop.eup %2637  ;;  %2653 = vrcp.f32 %v767_v29  ;;  %v464_v36 = vadd.f32 %v3083_v15, %v463_v34  ;;  %1250 = vperm.xlu0 %2604, %v2636_v32  }
 0x106   :  { %v2640_v37 = vpop.eup %2639  ;;  %v766_v38 = vadd.f32 1.0, %v2638_v35  ;;  %2655 = vpow2.f32 %v2117_v27  ;;  %v2119_v39 = vmul.f32 -1.442695, %v469_v33 }
 0x107   :  { %v2642_v40 = vpop.eup %2641  ;;  %v769_v41 = vadd.f32 1.0, %v2640_v37  ;;  %2657 = vpow2.f32 %v2116_v30  ;;  %v2355_v42 = vpop.f32.mrb[20].mxu0  ;;  %2454 = vmatprep.mubr.f32.mxu1 %v464_v36  ;;  %v2118_v44 = vmul.f32 -1.442695, %v464_v36 }
 0x108   :  { %v2644_v43 = vpop.eup %2643  ;;  %2659 = vrcp.f32 %v766_v38  ;;  %v479_v45 = vadd.f32 %v2355_v42, %v3083_v15  ;;  %v473_v46 = vpop.f32.mrb[21].mxu0  ;;  %2455 = vmatmul.mubr.f32.gmra.mrb[18].mxu1 %v469_v33  ;;  %1255 = vperm.xlu1 %2603, %v2642_v40  }
 0x109   :  { %2661 = vrcp.f32 %v769_v41  ;;  %v768_v47 = vadd.f32 1.0, %v2644_v43  ;;  %v474_v48 = vadd.f32 %v3083_v15, %v473_v46  ;;  %v2646_v49 = vpop.eup %2645 }
 0x10a   :  { %2663 = vpow2.f32 %v2119_v39  ;;  %v2121_v50 = vmul.f32 -1.442695, %v479_v45  ;;  %v2648_v51 = vpop.eup %2647  ;;  %1260 = vperm.xlu0 %2604, %v2646_v49  }
 0x10b   :  { %2665 = vrcp.f32 %v768_v47  ;;  %v2120_v52 = vmul.f32 -1.442695, %v474_v48  ;;  %v2358_v53 = vpop.f32.mrb[22].mxu0  ;;  %2457 = vmatprep.mubr.f32.mxu1 %v474_v48  ;;  %v2650_v57 = vpop.eup %2649 }
 0x10c   :  { %2667 = vpow2.f32 %v2118_v44  ;;  %v489_v55 = vadd.f32 %v2358_v53, %v3083_v15  ;;  %v483_v56 = vpop.f32.mrb[23].mxu0  ;;  %2458 = vmatmul.mubr.f32.gmra.mrb[20].mxu1 %v479_v45  ;;  %1265 = vperm.xlu1 %2603, %v2648_v51  }
 0x10d   :  { %2669 = vpow2.f32 %v2121_v50  ;;  %v484_v58 = vadd.f32 %v3083_v15, %v483_v56 }
 0x10e   :  { %v2652_v59 = vpop.eup %2651  ;;  %2671 = vpow2.f32 %v2120_v52  ;;  %v2123_v60 = vmul.f32 -1.442695, %v489_v55 }
 0x10f   :  { %v2654_v61 = vpop.eup %2653  ;;  %v2122_v62 = vmul.f32 -1.442695, %v484_v58  ;;  %1270 = vperm.xlu0 %2604, %v2652_v59   ;;  %v2361_v63 = vpop.f32.mrb[24].mxu0  ;;  %2460 = vmatprep.mubr.f32.mxu1 %v484_v58  ;;  %2673 = vpow2.f32 %v2115_v54 }
 0x110   :  { %v2656_v0 = vpop.eup %2655  ;;  %v499_v1 = vadd.f32 %v2361_v63, %v3083_v15  ;;  %v493_v2 = vpop.f32.mrb[25].mxu0  ;;  %2461 = vmatmul.mubr.f32.gmra.mrb[22].mxu1 %v489_v55  ;;  %1275 = vperm.xlu1 %2603, %v2650_v57   ;;  %2675 = vpow2.f32 %v2123_v60 }
 0x111   :  { %v2658_v3 = vpop.eup %2657  ;;  %v773_v4 = vadd.f32 1.0, %v2656_v0  ;;  %v494_v5 = vadd.f32 %v3083_v15, %v493_v2  ;;  %2677 = vpow2.f32 %v2122_v62 }
 0x112   :  { %v2660_v6 = vpop.eup %2659  ;;  %v772_v7 = vadd.f32 1.0, %v2658_v3  ;;  %v2125_v8 = vmul.f32 -1.442695, %v499_v1 }
 0x113   :  { %v2662_v9 = vpop.eup %2661  ;;  %2679 = vrcp.f32 %v773_v4  ;;  %v2124_v10 = vmul.f32 -1.442695, %v494_v5  ;;  %1280 = vperm.xlu0 %2604, %v2660_v6   ;;  %v2364_v11 = vpop.f32.mrb[26].mxu0  ;;  %2463 = vmatprep.mubr.f32.mxu1 %v494_v5 }
 0x114   :  { %v2664_v13 = vpop.eup %2663  ;;  %2681 = vrcp.f32 %v772_v7  ;;  %v509_v14 = vadd.f32 %v2364_v11, %v3083_v15  ;;  %v503_v16 = vpop.f32.mrb[27].mxu0  ;;  %2464 = vmatmul.mubr.f32.gmra.mrb[24].mxu1 %v499_v1  ;;  %1285 = vperm.xlu1 %2603, %v2654_v61  }
 0x115   :  { %v2666_v17 = vpop.eup %2665  ;;  %v775_v19 = vadd.f32 1.0, %v2664_v13  ;;  %2683 = vpow2.f32 %v2125_v8  ;;  %v504_v20 = vadd.f32 %v3083_v15, %v503_v16 }
 0x116   :  { %v2668_v21 = vpop.eup %2667  ;;  %2685 = vpow2.f32 %v2124_v10  ;;  %v2127_v22 = vmul.f32 -1.442695, %v509_v14 }
 0x117   :  { %v2670_v23 = vpop.eup %2669  ;;  %2687 = vrcp.f32 %v775_v19  ;;  %v774_v24 = vadd.f32 1.0, %v2668_v21  ;;  %1290 = vperm.xlu0 %2604, %v2666_v17   ;;  %v2367_v25 = vpop.f32.mrb[28].mxu0  ;;  %2466 = vmatprep.mubr.f32.mxu1 %v504_v20  ;;  %v2126_v28 = vmul.f32 -1.442695, %v504_v20 }
 0x118   :  { %v2672_v26 = vpop.eup %2671  ;;  %v777_v27 = vadd.f32 1.0, %v2670_v23  ;;  %2689 = vpow2.f32 %v2127_v22  ;;  %v519_v29 = vadd.f32 %v2367_v25, %v3083_v15  ;;  %v513_v12 = vpop.f32.mrb[29].mxu0  ;;  %2467 = vmatmul.mubr.f32.gmra.mrb[26].mxu1 %v509_v14  ;;  %1295 = vperm.xlu1 %2603, %v2662_v9  }
 0x119   :  { %2691 = vpow2.f32 %v2114_v18  ;;  %v514_v30 = vadd.f32 %v3083_v15, %v513_v12  ;;  %v3119_v31 = vpop.eup %2673  ;;  %v776_v34 = vadd.f32 1.0, %v2672_v26 }
 0x11a   :  { %2693 = vrcp.f32 %v777_v27  ;;  %v2129_v32 = vmul.f32 -1.442695, %v519_v29  ;;  %v2676_v33 = vpop.eup %2675 }
 0x11b   :  { %2695 = vrcp.f32 %v774_v24  ;;  %v2370_v35 = vpop.f32.mrb[30].mxu0  ;;  %2469 = vmatprep.mubr.f32.mxu1 %v514_v30  ;;  %v2678_v36 = vpop.eup %2677  ;;  %v779_v37 = vadd.f32 1.0, %v2676_v33  ;;  %v2128_v38 = vmul.f32 -1.442695, %v514_v30  ;;  %v771_v24 = vadd.f32 1.0, %v3119_v31 }
 0x11c   :  { %2697 = vpow2.f32 %v2126_v28  ;;  %v529_v39 = vadd.f32 %v2370_v35, %v3083_v15  ;;  %v523_v40 = vpop.f32.mrb[31].mxu0  ;;  %2470 = vmatmul.mubr.f32.gmra.mrb[28].mxu1 %v519_v29  ;;  %v778_v46 = vadd.f32 1.0, %v2678_v36 }
 0x11d   :  { %v2680_v41 = vpop.eup %2679  ;;  %2699 = vpow2.f32 %v2129_v32  ;;  %v524_v42 = vadd.f32 %v3083_v15, %v523_v40 }
 0x11e   :  { %v2682_v43 = vpop.eup %2681  ;;  %2701 = vrcp.f32 %v779_v37  ;;  %v2131_v44 = vmul.f32 -1.442695, %v529_v39  ;;  %1315 = vperm.xlu0 %2604, %v2680_v41  }
 0x11f   :  { %v2684_v45 = vpop.eup %2683  ;;  %2703 = vrcp.f32 %v776_v34  ;;  %v2373_v47 = vpop.f32.mrb[32].mxu0  ;;  %2472 = vmatprep.mubr.f32.mxu1 %v524_v42  ;;  %v2130_v50 = vmul.f32 -1.442695, %v524_v42 }
 0x120   :  { %v2686_v48 = vpop.eup %2685  ;;  %v781_v49 = vadd.f32 1.0, %v2684_v45  ;;  %2705 = vpow2.f32 %v2128_v38  ;;  %v539_v51 = vadd.f32 %v2373_v47, %v3083_v15  ;;  %v533_v52 = vpop.f32.mrb[33].mxu0  ;;  %2473 = vmatmul.mubr.f32.gmra.mrb[30].mxu1 %v529_v39 }
 0x121   :  { %v2688_v53 = vpop.eup %2687  ;;  %2707 = vpow2.f32 %v2131_v44  ;;  %v534_v54 = vadd.f32 %v3083_v15, %v533_v52  ;;  %v780_v58 = vadd.f32 1.0, %v2686_v48 }
 0x122   :  { %v2690_v55 = vpop.eup %2689  ;;  %2709 = vrcp.f32 %v781_v49  ;;  %v2133_v56 = vmul.f32 -1.442695, %v539_v51  ;;  %1310 = vperm.xlu0 %2604, %v2682_v43   ;;  %1325 = vperm.xlu1 %2603, %v2688_v53  }
 0x123   :  { %v2692_v57 = vpop.eup %2691  ;;  %2711 = vrcp.f32 %v778_v46  ;;  %v783_v59 = vadd.f32 1.0, %v2690_v55  ;;  %v2376_v60 = vpop.f32.mrb[34].mxu0  ;;  %2475 = vmatprep.mubr.f32.mxu1 %v534_v54  ;;  %v2132_v62 = vmul.f32 -1.442695, %v534_v54  ;;  %v1573_v55 = vlaneseq }
 0x124   :  { %v2694_v61 = vpop.eup %2693  ;;  %2713 = vpow2.f32 %v2130_v50  ;;  %v549_v63 = vadd.f32 %v2376_v60, %v3083_v15  ;;  %v543_v0 = vpop.f32.mrb[35].mxu0  ;;  %2476 = vmatmul.mubr.f32.gmra.mrb[32].mxu1 %v539_v51  ;;  %v770_v32 = vadd.f32 1.0, %v2692_v57 }
 0x125   :  { %v2696_v1 = vpop.eup %2695  ;;  %2715 = vrcp.f32 %v783_v59  ;;  %v544_v2 = vadd.f32 %v3083_v15, %v543_v0 }
 0x126   :  { %v2698_v3 = vpop.eup %2697  ;;  %2717 = vpow2.f32 %v2133_v56  ;;  %v2135_v4 = vmul.f32 -1.442695, %v549_v63  ;;  %1320 = vperm.xlu0 %2604, %v2696_v1   ;;  %1335 = vperm.xlu1 %2603, %v2694_v61   ;;  %v3130_v56 = vshrl.u32 %v1573_v55, 7  ;;  %v1863_v61 = vld [vmem:[%s3413_s1] sm:$0x7] }
 0x127   :  { %v2700_v5 = vpop.eup %2699  ;;  %2719 = vrcp.f32 %v780_v58  ;;  %v782_v6 = vadd.f32 1.0, %v2698_v3  ;;  %v2379_v7 = vpop.f32.mrb[36].mxu0  ;;  %2478 = vmatprep.mubr.f32.mxu1 %v544_v2  ;;  %v2134_v10 = vmul.f32 -1.442695, %v544_v2 }
 0x128   :  { %v2702_v8 = vpop.eup %2701  ;;  %v785_v9 = vadd.f32 1.0, %v2700_v5  ;;  %2721 = vpow2.f32 %v2132_v62  ;;  %v559_v11 = vadd.f32 %v2379_v7, %v3083_v15  ;;  %v553_v13 = vpop.f32.mrb[37].mxu0  ;;  %2479 = vmatmul.mubr.f32.gmra.mrb[34].mxu1 %v549_v63  ;;  %v1870_v59 = vsub.s32 1, %v3130_v56 }
 0x129   :  { %v2704_v14 = vpop.eup %2703  ;;  %2723 = vpow2.f32 %v2135_v4  ;;  %v554_v16 = vadd.f32 %v3083_v15, %v553_v13  ;;  %v1866_v62 = vsub.s32 0, %v3130_v56  ;;  %v2782_v7 = vmov 1.0  }
 0x12a   :  { %v2706_v17 = vpop.eup %2705  ;;  %2725 = vrcp.f32 %v785_v9  ;;  %v2137_v18 = vmul.f32 -1.442695, %v559_v11  ;;  %1330 = vperm.xlu0 %2604, %v2704_v14   ;;  %1345 = vperm.xlu1 %2603, %v2702_v8   ;;  %v1871_v1 = vrot.slane %v1863_v61, %v1870_v59 }
 0x12b   :  { %v2708_v19 = vpop.eup %2707  ;;  %2727 = vrcp.f32 %v782_v6  ;;  %v784_v20 = vadd.f32 1.0, %v2706_v17  ;;  %2481 = vmatprep.mubr.f32.mxu1 %v554_v16  ;;  %v2136_v26 = vmul.f32 -1.442695, %v554_v16  ;;  %v2382_v58 = vpop.f32.mrb[38].mxu0  ;;  %v3143_v3 = vrot.slane %v1863_v61, %v1866_v62 }
 0x12c   :  { %v2710_v21 = vpop.eup %2709  ;;  %v787_v22 = vadd.f32 1.0, %v2708_v19  ;;  %2729 = vpow2.f32 %v2134_v10  ;;  %2482 = vmatmul.mubr.f32.gmra.mrb[36].mxu1 %v559_v11  ;;  %v563_v60 = vpop.f32.mrb[39].mxu0  ;;  %v569_v2 = vadd.f32 %v2382_v58, %v3083_v15  ;;  %vm1877_vm1 = vcmp.eq.s32.totalorder %v1871_v1, %v3130_v56 }
 0x12d   :  { %v2712_v23 = vpop.eup %2711  ;;  %2731 = vpow2.f32 %v2137_v18  ;;  %v564_v63 = vadd.f32 %v3083_v15, %v563_v60  ;;  %2153 = vmatprep.mubr.msk.f32.mxu0 %vm1877_vm1, %v2782_v7  ;;  %vm1876_vm2 = vcmp.eq.s32.totalorder %v3143_v3, %v3130_v56 }
 0x12e   :  { %v2714_v25 = vpop.eup %2713  ;;  %2733 = vrcp.f32 %v787_v22  ;;  %1340 = vperm.xlu0 %2604, %v2712_v23   ;;  %1355 = vperm.xlu1 %2603, %v2710_v21  }
 0x12f   :  { %v2716_v27 = vpop.eup %2715  ;;  %2735 = vrcp.f32 %v784_v20  ;;  %v786_v28 = vadd.f32 1.0, %v2714_v25  ;;  %v2385_v4 = vpop.f32.mrb[40].mxu0  ;;  %2484 = vmatprep.mubr.f32.mxu1 %v564_v63  ;;  %v1874_v20 = vsub.s32 2, %v3130_v56 }
 0x130   :  { %v2718_v29 = vpop.eup %2717  ;;  %2737 = vrcp.f32 %v771_v24  ;;  %v573_v5 = vpop.f32.mrb[41].mxu0  ;;  %2485 = vmatmul.mubr.f32.gmra.mrb[38].mxu1 %v569_v2  ;;  %v579_v10 = vadd.f32 %v2385_v4, %v3083_v15 }
 0x131   :  { %v2720_v12 = vpop.eup %2719  ;;  %2739 = vpow2.f32 %v2136_v26  ;;  %v789_v31 = vadd.f32 1.0, %v2718_v29  ;;  %v574_v8 = vadd.f32 %v3083_v15, %v573_v5  ;;  %v3159_v23 = vrot.slane %v1863_v61, %v1874_v20 }
 0x132   :  { %v2722_v30 = vpop.eup %2721  ;;  %1350 = vperm.xlu0 %2604, %v2720_v12   ;;  %1365 = vperm.xlu1 %2603, %v2716_v27   ;;  %2741 = vrcp.f32 %v786_v28 }
 0x133   :  { %v2724_v33 = vpop.eup %2723  ;;  %2743 = vrcp.f32 %v770_v32  ;;  %v788_v37 = vadd.f32 1.0, %v2722_v30  ;;  %v2388_v11 = vpop.f32.mrb[42].mxu0  ;;  %2487 = vmatprep.mubr.f32.mxu1 %v574_v8  ;;  %vm1878_vm3 = vcmp.eq.s32.totalorder %v3159_v23, %v3130_v56 }
 0x134   :  { %v2726_v34 = vpop.eup %2725  ;;  %2745 = vrcp.f32 %v789_v31  ;;  %v791_v39 = vadd.f32 1.0, %v2724_v33  ;;  %v583_v13 = vpop.f32.mrb[43].mxu0  ;;  %2488 = vmatmul.mubr.f32.gmra.mrb[40].mxu1 %v579_v10  ;;  %v589_v16 = vadd.f32 %v2388_v11, %v3083_v15 }
 0x135   :  { %v2728_v35 = vpop.eup %2727  ;;  %2747 = vrcp.f32 %v788_v37  ;;  %v584_v14 = vadd.f32 %v3083_v15, %v583_v13 }
 0x136   :  { %v2730_v36 = vpop.eup %2729  ;;  %1360 = vperm.xlu0 %2604, %v2728_v35   ;;  %1375 = vperm.xlu1 %2603, %v2726_v34   ;;  %2749 = vrcp.f32 %v791_v39 }
 0x137   :  { %v2732_v38 = vpop.eup %2731  ;;  %v790_v42 = vadd.f32 1.0, %v2730_v36  ;;  %v2391_v18 = vpop.f32.mrb[44].mxu0  ;;  %2490 = vmatprep.mubr.f32.mxu1 %v584_v14 }
 0x138   :  { %v2734_v40 = vpop.eup %2733  ;;  %v793_v44 = vadd.f32 1.0, %v2732_v38  ;;  %v593_v21 = vpop.f32.mrb[45].mxu0  ;;  %2491 = vmatmul.mubr.f32.gmra.mrb[42].mxu1 %v589_v16  ;;  %v599_v24 = vadd.f32 %v2391_v18, %v3083_v15 }
 0x139   :  { %v2736_v41 = vpop.eup %2735  ;;  %2751 = vrcp.f32 %v790_v42  ;;  %v594_v22 = vadd.f32 %v3083_v15, %v593_v21 }
 0x13a   :  { %1370 = vperm.xlu0 %2604, %v2736_v41   ;;  %1385 = vperm.xlu1 %2603, %v2734_v40   ;;  %v2738_v43 = vpop.eup %2737  ;;  %2753 = vrcp.f32 %v793_v44  ;;  %v3191_v41 = vld [vmem:[%s3417_s5] ss:$0 sm:$0xff]  ;;  %s2787_s5 = smov [#allocation2]  }
 0x13b   :  { %v2740_v45 = vpop.eup %2739  ;;  %v2394_v25 = vpop.f32.mrb[46].mxu0  ;;  %2493 = vmatprep.mubr.f32.mxu1 %v594_v22 }
 0x13c   :  { %v2742_v46 = vpop.eup %2741  ;;  %v792_v47 = vadd.f32 1.0, %v2740_v45  ;;  %v609_v26 = vadd.f32 %v2394_v25, %v3083_v15  ;;  %v603_v27 = vpop.f32.mrb[47].mxu0  ;;  %2494 = vmatmul.mubr.f32.gmra.mrb[44].mxu1 %v599_v24 }
 0x13d   :  { %v2744_v48 = vpop.eup %2743  ;;  %v604_v29 = vadd.f32 %v3083_v15, %v603_v27 }
 0x13e   :  { %1380 = vperm.xlu0 %2604, %v2742_v46   ;;  %1305 = vperm.xlu1 %2603, %v2738_v43   ;;  %v2746_v49 = vpop.eup %2745  ;;  %2755 = vrcp.f32 %v792_v47  ;;  %v3201_v47 = vld [vmem:[%s3418_s6] ss:$0 sm:$0xff]  ;;  %s2034_s6 = sshll.u32 %s2787_s5, 4  ;;  %s2035_s6 = int_to_ptr.vmem [resolvable:$true] %s2034_s6 }
 0x13f   :  { %v2748_v50 = vpop.eup %2747  ;;  %2496 = vmatprep.mubr.f32.mxu1 %v604_v29  ;;  %s2757_s20 = scalar_lea.vmem %s2035_s6, 128  ;;  %p2762_p1 = scmp.lt.s32.totalorder %s2035_s6, %s2035_s6 }
 0x140   :  { %v2750_v51 = vpop.eup %2749  ;;  %2497 = vmatmul.mubr.f32.gmra.mrb[46].mxu1 %v609_v26  ;;  %p2758_p0 = scmp.ne.s32.totalorder %s2035_s6, %s2757_s20  ;;  %p2763_p2 = scmp.lt.s32.totalorder %s2757_s20, %s2757_s20 }
 0x142   :  { %1300 = vperm.xlu0 %2604, %v2744_v48   ;;  %1395 = vperm.xlu1 %2603, %v2746_v49   ;;  %p2764_p3 = por %p2763_p2, %p2762_p1 }
 0x143   :  { %v2752_v52 = vpop.eup %2751 }
 0x144   :  { %v2754_v53 = vpop.eup %2753  ;;  %p2765_p4 = pnand %p2764_p3, %p2758_p0 }
 0x146   :  { %1390 = vperm.xlu0 %2604, %v2748_v50   ;;  %1405 = vperm.xlu1 %2603, %v2750_v51  }
 0x148   :  { %v2756_v54 = vpop.eup %2755 }
 0x14a   :  { %1400 = vperm.xlu0 %2604, %v2752_v52   ;;  %1415 = vperm.xlu1 %2603, %v2754_v53  }
 0x14e   :  { %1410 = vperm.xlu0 %2604, %v2756_v54  }
 0x17b   :  { %v3132_v57 = vpop.permute.xlu1 %1235 }
 0x17f   :  { %v1231_v6 = vpop.permute.xlu1 %1230 }
 0x180   :  { %v3140_v0 = vpop.permute.xlu0 %1240 }
 0x183   :  { %v1246_v17 = vpop.permute.xlu1 %1245 }
 0x184   :  { %v3150_v9 = vpop.permute.xlu0 %1250 }
 0x187   :  { %v1256_v28 = vpop.permute.xlu1 %1255 }
 0x189   :  { %v3155_v19 = vpop.permute.xlu0 %1260 }
 0x18b   :  { %v1266_v30 = vpop.permute.xlu1 %1265 }
 0x18e   :  { %v3166_v12 = vpop.permute.xlu0 %1270 }
 0x18f   :  { %v1276_v33 = vpop.permute.xlu1 %1275 }
 0x192   :  { %v3168_v32 = vpop.permute.xlu0 %1280 }
 0x193   :  { %v3174_v35 = vpop.permute.xlu1 %1285 }
 0x196   :  { %v3170_v31 = vpop.permute.xlu0 %1290 }
 0x197   :  { %v3178_v37 = vpop.permute.xlu1 %1295 }
 0x19d   :  { %v3172_v34 = vpop.permute.xlu0 %1315 }
 0x1a1   :  { %v3176_v36 = vpop.permute.xlu0 %1310  ;;  %v3180_v38 = vpop.permute.xlu1 %1325 }
 0x1a5   :  { %v3182_v15 = vpop.permute.xlu0 %1320  ;;  %v3184_v39 = vpop.permute.xlu1 %1335 }
 0x1a9   :  { %v3186_v40 = vpop.permute.xlu0 %1330  ;;  %v3193_v42 = vpop.permute.xlu1 %1345 }
 0x1ad   :  { %v3195_v44 = vpop.permute.xlu0 %1340  ;;  %v3209_v55 = vpop.permute.xlu1 %1355 }
 0x1b1   :  { %v3215_v60 = vpop.permute.xlu0 %1350  ;;  %v3228_v10 = vpop.permute.xlu1 %1365 }
 0x1b5   :  { %v3233_v14 = vpop.permute.xlu0 %1360  ;;  %v3250_v29 = vpop.permute.xlu1 %1375 }
 0x1b7   :  { %v2429_v43 = vpop.f32.mrb[0].mxu1 }
 0x1b8   :  { %v995_v45 = vadd.f32 %v2429_v43, %v3191_v41  ;;  %v989_v46 = vpop.f32.mrb[1].mxu1 }
 0x1b9   :  { %v990_v48 = vadd.f32 %v3191_v41, %v989_v46 }
 0x1ba   :  { %v1469_v49 = vmul.f32 %v3132_v57, %v995_v45 }
 0x1bb   :  { %v1468_v50 = vmul.f32 %v1231_v6, %v990_v48  ;;  %v2432_v51 = vpop.f32.mrb[2].mxu1 }
 0x1bc   :  { %v3206_v52 = vadd.f32 %v3201_v47, %v1469_v49  ;;  %v1005_v53 = vadd.f32 %v2432_v51, %v3191_v41  ;;  %v999_v54 = vpop.f32.mrb[3].mxu1 }
 0x1bd   :  { %v3212_v58 = vadd.f32 %v3201_v47, %v1468_v50  ;;  %v1000_v59 = vadd.f32 %v3191_v41, %v999_v54 }
 0x1be   :  { %v1471_v61 = vmul.f32 %v1246_v17, %v1005_v53 }
 0x1bf   :  { %v2556_v57 = vpack.c.bf16 %v3206_v52, %v3212_v58  ;;  %v1470_v62 = vmul.f32 %v3140_v0, %v1000_v59  ;;  %v2435_v63 = vpop.f32.mrb[4].mxu1 }
 0x1c0   :  { %v3221_v1 = vadd.f32 %v3201_v47, %v1471_v61  ;;  %v1015_v2 = vadd.f32 %v2435_v63, %v3191_v41  ;;  %v1009_v4 = vpop.f32.mrb[5].mxu1 }
 0x1c1   :  { %v3225_v5 = vadd.f32 %v3201_v47, %v1470_v62  ;;  %v1010_v6 = vadd.f32 %v3191_v41, %v1009_v4 }
 0x1c2   :  { %v1473_v8 = vmul.f32 %v1256_v28, %v1015_v2 }
 0x1c3   :  { %v2560_v11 = vpack.c.bf16 %v3221_v1, %v3225_v5  ;;  %v1472_v0 = vmul.f32 %v3150_v9, %v1010_v6  ;;  %v2438_v13 = vpop.f32.mrb[6].mxu1 }
 0x1c4   :  { %v3236_v16 = vadd.f32 %v3201_v47, %v1473_v8  ;;  %v1025_v17 = vadd.f32 %v2438_v13, %v3191_v41  ;;  %v1019_v18 = vpop.f32.mrb[7].mxu1 }
 0x1c5   :  { %v3240_v20 = vadd.f32 %v3201_v47, %v1472_v0  ;;  %v1020_v21 = vadd.f32 %v3191_v41, %v1019_v18 }
 0x1c6   :  { %v1475_v22 = vmul.f32 %v1266_v30, %v1025_v17  ;;  %v3256_v30 = vpop.permute.xlu0 %1370 }
 0x1c7   :  { %v2564_v24 = vpack.c.bf16 %v3236_v16, %v3240_v20  ;;  %v1474_v9 = vmul.f32 %v3155_v19, %v1020_v21  ;;  %v2441_v25 = vpop.f32.mrb[8].mxu1 }
 0x1c8   :  { %v3247_v26 = vadd.f32 %v3201_v47, %v1475_v22  ;;  %v1035_v27 = vadd.f32 %v2441_v25, %v3191_v41  ;;  %v1029_v28 = vpop.f32.mrb[9].mxu1 }
 0x1c9   :  { %v3253_v43 = vadd.f32 %v3201_v47, %v1474_v9  ;;  %v1030_v45 = vadd.f32 %v3191_v41, %v1029_v28 }
 0x1ca   :  { %v1477_v46 = vmul.f32 %v1276_v33, %v1035_v27  ;;  %v3270_v33 = vpop.permute.xlu1 %1385  ;;  %v3275_v2 = vpop.permute.xlu0 %1380 }
 0x1cb   :  { %v2568_v19 = vpack.c.bf16 %v3247_v26, %v3253_v43  ;;  %v1476_v48 = vmul.f32 %v3166_v12, %v1030_v45  ;;  %v2444_v49 = vpop.f32.mrb[10].mxu1 }
 0x1cc   :  { %v3262_v50 = vadd.f32 %v3201_v47, %v1477_v46  ;;  %v1045_v51 = vadd.f32 %v2444_v49, %v3191_v41  ;;  %v1039_v53 = vpop.f32.mrb[11].mxu1 }
 0x1cd   :  { %v3266_v54 = vadd.f32 %v3201_v47, %v1476_v48  ;;  %v1040_v59 = vadd.f32 %v3191_v41, %v1039_v53 }
 0x1ce   :  { %v1479_v61 = vmul.f32 %v3174_v35, %v1045_v51  ;;  %v1306_v25 = vpop.permute.xlu1 %1305  ;;  %v1301_v45 = vpop.permute.xlu0 %1300 }
 0x1cf   :  { %v2572_v62 = vpack.c.bf16 %v3262_v50, %v3266_v54  ;;  %v1478_v12 = vmul.f32 %v3168_v32, %v1040_v59  ;;  %v2447_v63 = vpop.f32.mrb[12].mxu1 }
 0x1d0   :  { %v3278_v4 = vadd.f32 %v3201_v47, %v1479_v61  ;;  %v1055_v6 = vadd.f32 %v2447_v63, %v3191_v41  ;;  %v1049_v8 = vpop.f32.mrb[13].mxu1 }
 0x1d1   :  { %v3282_v0 = vadd.f32 %v3201_v47, %v1478_v12  ;;  %v1050_v35 = vadd.f32 %v3191_v41, %v1049_v8 }
 0x1d2   :  { %v1481_v13 = vmul.f32 %v3178_v37, %v1055_v6 }
 0x1d3   :  { %v2576_v17 = vpack.c.bf16 %v3278_v4, %v3282_v0  ;;  %v1480_v32 = vmul.f32 %v3170_v31, %v1050_v35  ;;  %v2450_v18 = vpop.f32.mrb[14].mxu1 }
 0x1d4   :  { %v3290_v21 = vadd.f32 %v3201_v47, %v1481_v13  ;;  %v1065_v22 = vadd.f32 %v2450_v18, %v3191_v41  ;;  %v1059_v9 = vpop.f32.mrb[15].mxu1 }
 0x1d5   :  { %v3294_v27 = vadd.f32 %v3201_v47, %v1480_v32  ;;  %v1060_v28 = vadd.f32 %v3191_v41, %v1059_v9 }
 0x1d6   :  { %v1483_v37 = vmul.f32 %v1306_v25, %v1065_v22 }
 0x1d7   :  { %v2580_v46 = vpack.c.bf16 %v3290_v21, %v3294_v27  ;;  %v1482_v48 = vmul.f32 %v1301_v45, %v1060_v28  ;;  %v2453_v31 = vpop.f32.mrb[16].mxu1 }
 0x1d8   :  { %v3300_v49 = vadd.f32 %v3201_v47, %v1483_v37  ;;  %v1075_v51 = vadd.f32 %v2453_v31, %v3191_v41  ;;  %v1069_v53 = vpop.f32.mrb[17].mxu1 }
 0x1d9   :  { %v3304_v59 = vadd.f32 %v3201_v47, %v1482_v48  ;;  %v1070_v61 = vadd.f32 %v3191_v41, %v1069_v53 }
 0x1da   :  { %v1485_v12 = vmul.f32 %v3172_v34, %v1075_v51 }
 0x1db   :  { %v2584_v63 = vpack.c.bf16 %v3300_v49, %v3304_v59  ;;  %v1484_v6 = vmul.f32 %v3176_v36, %v1070_v61  ;;  %v2456_v8 = vpop.f32.mrb[18].mxu1 }
 0x1dc   :  { %v1540_v35 = vadd.f32 %v3201_v47, %v1485_v12  ;;  %v1085_v13 = vadd.f32 %v2456_v8, %v3191_v41  ;;  %v1079_v32 = vpop.f32.mrb[19].mxu1 }
 0x1dd   :  { %v1539_v18 = vadd.f32 %v3201_v47, %v1484_v6  ;;  %v1080_v22 = vadd.f32 %v3191_v41, %v1079_v32 }
 0x1de   :  { %v1487_v9 = vmul.f32 %v3180_v38, %v1085_v13 }
 0x1df   :  { %v1486_v25 = vmul.f32 %v3182_v15, %v1080_v22  ;;  %v2459_v34 = vpop.f32.mrb[20].mxu1  ;;  %v2554_v28 = vpack.c.bf16 %v1540_v35, %v1539_v18 }
 0x1e0   :  { %v1542_v45 = vadd.f32 %v3201_v47, %v1487_v9  ;;  %v1095_v36 = vadd.f32 %v2459_v34, %v3191_v41  ;;  %v1089_v37 = vpop.f32.mrb[21].mxu1 }
 0x1e1   :  { %v1541_v48 = vadd.f32 %v3201_v47, %v1486_v25  ;;  %v1090_v31 = vadd.f32 %v3191_v41, %v1089_v37  ;;  %2555 = vmatprep.subr.bf16.mxu0 %v2554_v28 }
 0x1e2   :  { %v1489_v51 = vmul.f32 %v3184_v39, %v1095_v36  ;;  %2557 = vmatpush3.bf16.msra.mxu0 %v2556_v57 }
 0x1e3   :  { %v1488_v38 = vmul.f32 %v3186_v40, %v1090_v31  ;;  %v2462_v15 = vpop.f32.mrb[22].mxu1  ;;  %v2558_v53 = vpack.c.bf16 %v1542_v45, %v1541_v48 }
 0x1e4   :  { %v1544_v61 = vadd.f32 %v3201_v47, %v1489_v51  ;;  %v1105_v12 = vadd.f32 %v2462_v15, %v3191_v41  ;;  %v1099_v6 = vpop.f32.mrb[23].mxu1 }
 0x1e5   :  { %v1543_v8 = vadd.f32 %v3201_v47, %v1488_v38  ;;  %v1100_v35 = vadd.f32 %v3191_v41, %v1099_v6  ;;  %2559 = vmatprep.subr.bf16.mxu0 %v2558_v53  ;;  %v1396_v38 = vpop.permute.xlu1 %1395 }
 0x1e6   :  { %v1491_v39 = vmul.f32 %v3193_v42, %v1105_v12  ;;  %2561 = vmatpush3.bf16.msra.mxu0 %v2560_v11 }
 0x1e7   :  { %v1490_v40 = vmul.f32 %v3195_v44, %v1100_v35  ;;  %v2465_v52 = vpop.f32.mrb[24].mxu1  ;;  %v2562_v58 = vpack.c.bf16 %v1544_v61, %v1543_v8 }
 0x1e8   :  { %v1546_v57 = vadd.f32 %v3201_v47, %v1491_v39  ;;  %v1115_v13 = vadd.f32 %v2465_v52, %v3191_v41  ;;  %v1109_v32 = vpop.f32.mrb[25].mxu1 }
 0x1e9   :  { %v1545_v18 = vadd.f32 %v3201_v47, %v1490_v40  ;;  %v1110_v22 = vadd.f32 %v3191_v41, %v1109_v32  ;;  %2563 = vmatprep.subr.bf16.mxu0 %v2562_v58 }
 0x1ea   :  { %v1493_v42 = vmul.f32 %v3209_v55, %v1115_v13  ;;  %2565 = vmatpush3.bf16.msra.mxu0 %v2564_v24 }
 0x1eb   :  { %v1492_v44 = vmul.f32 %v3215_v60, %v1110_v22  ;;  %v2468_v1 = vpop.f32.mrb[26].mxu1  ;;  %v2566_v5 = vpack.c.bf16 %v1546_v57, %v1545_v18  ;;  %v2783_v18 = vmov 0.0|0.0  }
 0x1ec   :  { %v1548_v11 = vadd.f32 %v3201_v47, %v1493_v42  ;;  %v1125_v9 = vadd.f32 %v2468_v1, %v3191_v41  ;;  %v1119_v25 = vpop.f32.mrb[27].mxu1  ;;  %v1611_v1 = vadd.s32 296, %v3130_v56 }
 0x1ed   :  { %v1547_v34 = vadd.f32 %v3201_v47, %v1492_v44  ;;  %v1120_v28 = vadd.f32 %v3191_v41, %v1119_v25  ;;  %2567 = vmatprep.subr.bf16.mxu0 %v2566_v5 }
 0x1ee   :  { %v1495_v55 = vmul.f32 %v3228_v10, %v1125_v9  ;;  %2569 = vmatpush3.bf16.msra.mxu0 %v2568_v19  ;;  %vm1708_vm5 = vcmp.lt.s32.totalorder %v1611_v1, 300 }
 0x1ef   :  { %v1494_v60 = vmul.f32 %v3233_v14, %v1120_v28  ;;  %v2471_v16 = vpop.f32.mrb[28].mxu1  ;;  %v2570_v20 = vpack.c.bf16 %v1548_v11, %v1547_v34  ;;  %vm2594_vm7 = vmpackc.low %vm1708_vm5, %vm2786_vm6 }
 0x1f0   :  { %v1550_v24 = vadd.f32 %v3201_v47, %v1495_v55  ;;  %v1135_v45 = vadd.f32 %v2471_v16, %v3191_v41  ;;  %v1129_v36 = vpop.f32.mrb[29].mxu1 }
 0x1f1   :  { %v1549_v37 = vadd.f32 %v3201_v47, %v1494_v60  ;;  %v1130_v48 = vadd.f32 %v3191_v41, %v1129_v36  ;;  %2571 = vmatprep.subr.bf16.mxu0 %v2570_v20 }
 0x1f2   :  { %v1497_v10 = vmul.f32 %v3250_v29, %v1135_v45  ;;  %2573 = vmatpush3.bf16.msra.mxu0 %v2572_v62  ;;  %v1391_v29 = vpop.permute.xlu0 %1390 }
 0x1f3   :  { %v1496_v14 = vmul.f32 %v3256_v30, %v1130_v48  ;;  %v2474_v26 = vpop.f32.mrb[30].mxu1  ;;  %v2574_v43 = vpack.c.bf16 %v1550_v24, %v1549_v37 }
 0x1f4   :  { %v1552_v19 = vadd.f32 %v3201_v47, %v1497_v10  ;;  %v1145_v31 = vadd.f32 %v2474_v26, %v3191_v41  ;;  %v1139_v51 = vpop.f32.mrb[31].mxu1 }
 0x1f5   :  { %v1551_v15 = vadd.f32 %v3201_v47, %v1496_v14  ;;  %v1140_v53 = vadd.f32 %v3191_v41, %v1139_v51  ;;  %2575 = vmatprep.subr.bf16.mxu0 %v2574_v43 }
 0x1f6   :  { %v1499_v61 = vmul.f32 %v3270_v33, %v1145_v31  ;;  %2577 = vmatpush3.bf16.msra.mxu0 %v2576_v17  ;;  %v1406_v33 = vpop.permute.xlu1 %1405  ;;  %v1401_v17 = vpop.permute.xlu0 %1400 }
 0x1f7   :  { %v1498_v30 = vmul.f32 %v3275_v2, %v1140_v53  ;;  %v2477_v50 = vpop.f32.mrb[32].mxu1  ;;  %v2578_v54 = vpack.c.bf16 %v1552_v19, %v1551_v15 }
 0x1f8   :  { %v1554_v62 = vadd.f32 %v3201_v47, %v1499_v61  ;;  %v1155_v12 = vadd.f32 %v2477_v50, %v3191_v41  ;;  %v1149_v6 = vpop.f32.mrb[33].mxu1 }
 0x1f9   :  { %v1553_v8 = vadd.f32 %v3201_v47, %v1498_v30  ;;  %v1150_v35 = vadd.f32 %v3191_v41, %v1149_v6  ;;  %2579 = vmatprep.subr.bf16.mxu0 %v2578_v54 }
 0x1fa   :  { %v1501_v39 = vmul.f32 %v1396_v38, %v1155_v12  ;;  %2581 = vmatpush3.bf16.msra.mxu0 %v2580_v46  ;;  %v1416_v5 = vpop.permute.xlu1 %1415  ;;  %v1411_v49 = vpop.permute.xlu0 %1410 }
 0x1fb   :  { %v1500_v4 = vmul.f32 %v1391_v29, %v1150_v35  ;;  %v2480_v2 = vpop.f32.mrb[34].mxu1  ;;  %v2582_v0 = vpack.c.bf16 %v1554_v62, %v1553_v8 }
 0x1fc   :  { %v1556_v40 = vadd.f32 %v3201_v47, %v1501_v39  ;;  %v1165_v52 = vadd.f32 %v2480_v2, %v3191_v41  ;;  %v1159_v58 = vpop.f32.mrb[35].mxu1 }
 0x1fd   :  { %v1555_v57 = vadd.f32 %v3201_v47, %v1500_v4  ;;  %v1160_v13 = vadd.f32 %v3191_v41, %v1159_v58  ;;  %2583 = vmatprep.subr.bf16.mxu0 %v2582_v0 }
 0x1fe   :  { %v1503_v32 = vmul.f32 %v1406_v33, %v1165_v52  ;;  %2585 = vmatpush3.bf16.msra.mxu0 %v2584_v63  ;;  %v2785_v63 = vmov 0.0  }
 0x1ff   :  { %v2587_v21 = vpack.c.bf16 %v1556_v40, %v1555_v57  ;;  %v1502_v27 = vmul.f32 %v1401_v17, %v1160_v13  ;;  %v2483_v46 = vpop.f32.mrb[36].mxu1  ;;  %2586 = vmatprep.subr.bf16.mxu0 %v2783_v18 }
 0x200   :  { %v1558_v22 = vadd.f32 %v3201_v47, %v1503_v32  ;;  %v1175_v42 = vadd.f32 %v2483_v46, %v3191_v41  ;;  %v1169_v44 = vpop.f32.mrb[37].mxu1 }
 0x201   :  { %v1557_v11 = vadd.f32 %v3201_v47, %v1502_v27  ;;  %v1170_v9 = vadd.f32 %v3191_v41, %v1169_v44  ;;  %2154 = vmatmul.mubr.msk.f32.vlgmr.msra.gmra.mrb[48].mxu0 %vm1876_vm2, %v2782_v7 }
 0x202   :  { %v1505_v59 = vmul.f32 %v1416_v5, %v1175_v42  ;;  %2588 = vmatpush3.bf16.msra.mxu0 %v2587_v21  ;;  %2511 = vmatprep.mubr.msk.f32.mxu0 %vm2784_vm4, %v2785_v63 }
 0x203   :  { %v2590_v25 = vpack.c.bf16 %v1558_v22, %v1557_v11  ;;  %v1504_v34 = vmul.f32 %v1411_v49, %v1170_v9  ;;  %2589 = vmatprep.subr.bf16.mxu0 %v2783_v18  ;;  %v2486_v3 = vpop.f32.mrb[38].mxu1 }
 0x204   :  { %v1560_v28 = vadd.f32 %v3201_v47, %v1505_v59  ;;  %v1179_v60 = vpop.f32.mrb[39].mxu1 }
 0x205   :  { %v1559_v55 = vadd.f32 %v3201_v47, %v1504_v34 }
 0x206   :  { %2591 = vmatpush3.bf16.msra.mxu0 %v2590_v25 }
 0x207   :  { %v2593_v41 = vpack.c.bf16 %v1560_v28, %v1559_v55  ;;  %2592 = vmatprep.subr.bf16.mxu0 %v2783_v18  ;;  %v2489_v16 = vpop.f32.mrb[40].mxu1 }
 0x208   :  { %v1189_v20 = vpop.f32.mrb[41].mxu1 }
 0x20a   :  { %2595 = vmatpush3.bf16.msk.msra.mxu0 %vm2594_vm7, %v2593_v41 }
 0x20b   :  { %v2492_v24 = vpop.f32.mrb[42].mxu1 }
 0x20c   :  { %v1199_v45 = vpop.f32.mrb[43].mxu1 }
 0x20d   :  { %2512 = vmatmul.mubr.msk.f32.vlgmr.msra.gmra.mrb[50].mxu0 %vm1878_vm3, %v2782_v7 }
 0x20f   :  { %v2495_v36 = vpop.f32.mrb[44].mxu1 }
 0x210   :  { %v1209_v37 = vpop.f32.mrb[45].mxu1 }
 0x213   :  { %v2498_v47 = vpop.f32.mrb[46].mxu1 }
 0x214   :  { %v1219_v48 = vpop.f32.mrb[47].mxu1 }
 0x2d4   :  { %v2305_v10 = vpop.f32.mrb[48].mxu0 }
 0x2d5   :  { %v2306_v14 = vpop.f32.mrb[49].mxu0 }
 0x2d6   :  { %v2307_v26 = vadd.f32 %v2306_v14, %v2305_v10 }
 0x2e0   :  { %v2022_v43 = vpop.f32.mrb[50].mxu0 }
 0x2e1   :  { %v2023_v19 = vadd.f32 %v2307_v26, %v2022_v43  ;;  %v2513_v31 = vpop.f32.mrb[51].mxu0 }
 0x2e3   :  { %2027 = vst [vmem:[#allocation2] sm:$0xff] %v2023_v19 }
 0x2e4   :  { %2768 = shalt.err (!%p2765_p4)
}
 0x2e5   :  { %s2769_s23 = scalar_lea.hbm %s3419_s7, 128 }
 0x2e6   :  { %p2770_p5 = scmp.ne.s32.totalorder %s3419_s7, %s2769_s23  ;;  %p2773_p6 = scmp.lt.u32.totalorder %s2769_s23, %s3419_s7 }
 0x2e8   :  { %p2775_p7 = pnand %p2773_p6, %p2770_p5 }
 0x2ea   :  { %2778 = shalt.err (!%p2775_p7)
}
 0x2eb   :  { %2037 = dma.vmem_to_hbm [thread:$0]  %s2035_s6, 128, %s3419_s7, [#allocation3]  }
 0x2ec   :  { %2779 = dma.done.wait [#allocation3], 128  }
 0x2ed   :  { %2780 = vsyncadd [#allocation3], 4294967168 }
 0x2ee   :  { %2041 = vsyncpa [#allocation3], 1 }

</bundles_post_ra>
